<compile_context>
chip_gen: v7x
topology: tpu7x:2x2x1
jax: 0.10.0
libtpu: 0.0.40
codegen_flags: <defaults>
</compile_context>

<pallas_src>
import functools

import jax
import jax.numpy as jnp
from jax import lax
from jax.experimental import pallas as pl
from jax.experimental.pallas import tpu as pltpu


# ----------------------------------------------------------------------------
# Kernel
# ----------------------------------------------------------------------------

def _layer_norm_f32(v, g, b, eps=1e-5):
    mu = jnp.mean(v, axis=-1, keepdims=True)
    var = jnp.mean((v - mu) ** 2, axis=-1, keepdims=True)
    return (v - mu) * lax.rsqrt(var + eps) * g + b


def encoder_stack_kernel(mask_ref, x_ref,
                         ln1_ref, wqkv_ref, bqkv_ref, wo_ref, bo_ref,
                         ln2_ref, w1_ref, b1_ref, w2_ref, b2_ref,
                         lnf_ref,
                         out_ref,
                         *, n_head, q_tile, exp_dtype):
    l = pl.program_id(1)

    # First layer step of this batch tile: seed the residual stream, which
    # lives in out_ref's VMEM block (same block index across the layer axis,
    # so it stays resident and is written back to HBM only once per tile).
    @pl.when(l == 0)
    def _():
        out_ref[...] = x_ref[...]

    TB, S, D = out_ref.shape
    H = n_head
    dh = D // H
    TQ = q_tile
    n_q_tiles = S // TQ

    x = out_ref[...]                          # (TB, S, D) f32 residual
    mask_b = mask_ref[...][:, :, None, :]     # (TB, 1, 1, S) additive bias (/sqrt(dh))

    # ---- sublayer 1: pre-LN + fused-QKV multi-head self-attention + residual
    x_ln = _layer_norm_f32(x, ln1_ref[0, 0:1, :], ln1_ref[0, 1:2, :]
                           ).astype(jnp.bfloat16)
    qkv = jnp.dot(x_ln.reshape(TB * S, D), wqkv_ref[0],
                  preferred_element_type=jnp.float32) + bqkv_ref[0]    # (TB*S, 3D)
    q = qkv[:, 0:D] * (dh ** -0.5)            # fold 1/sqrt(dh) into q
    k = qkv[:, D:2 * D]
    v = qkv[:, 2 * D:3 * D]

    def heads(t):  # (TB*S, D) -> (TB*H, S, dh), bf16 MXU operand
        return t.reshape(TB, S, H, dh).transpose(0, 2, 1, 3
                                                 ).reshape(TB * H, S, dh).astype(jnp.bfloat16)

    q3, k3, v3 = heads(q), heads(k), heads(v)

    # Query-tiled attention: bounds live scores to (TB*H, TQ, S); per-tile
    # attention output is projected and added straight into the residual rows.
    for t in range(n_q_tiles):
        sl = slice(t * TQ, (t + 1) * TQ)
        q_t = q3[:, sl, :]
        s = lax.dot_general(q_t, k3, (((2,), (2,)), ((0,), (0,))),
                            preferred_element_type=jnp.float32)        # (TB*H, TQ, S)
        s = s.reshape(TB, H, TQ, S) + mask_b
        s = s - jnp.max(s, axis=-1, keepdims=True)
        p = jnp.exp(s.astype(exp_dtype))                               # bf16 on v6e/v7x
        denom = jnp.sum(p.astype(jnp.float32), axis=-1, keepdims=True)
        inv = pl.reciprocal(denom, approx=True)                        # (TB, H, TQ, 1)
        o_t = lax.dot_general(p.reshape(TB * H, TQ, S).astype(jnp.bfloat16),
                              v3, (((2,), (1,)), ((0,), (0,))),
                              preferred_element_type=jnp.float32)      # (TB*H, TQ, dh)
        o_t = o_t.reshape(TB, H, TQ, dh) * inv                         # fold softmax norm
        attn_t = o_t.transpose(0, 2, 1, 3).reshape(TB * TQ, D)
        proj_t = jnp.dot(attn_t.astype(jnp.bfloat16), wo_ref[0],
                         preferred_element_type=jnp.float32) + bo_ref[0]
        # TODO(synk): dropout is identity (eval mode); no train-mode RNG dropout.
        out_ref[:, sl, :] = x[:, sl, :] + proj_t.reshape(TB, TQ, D)

    x1 = out_ref[...]

    # ---- sublayer 2: pre-LN + position-wise FFN + residual
    x_ln2 = _layer_norm_f32(x1, ln2_ref[0, 0:1, :], ln2_ref[0, 1:2, :]
                            ).astype(jnp.bfloat16)
    h = jnp.dot(x_ln2.reshape(TB * S, D), w1_ref[0],
                preferred_element_type=jnp.float32) + b1_ref[0]
    h = jnp.maximum(h, 0.0).astype(jnp.bfloat16)
    ffn = jnp.dot(h, w2_ref[0],
                  preferred_element_type=jnp.float32) + b2_ref[0]
    x2 = x1 + ffn.reshape(TB, S, D)

    # Non-last layers: keep the residual resident.  Last layer: fuse the final
    # LayerNorm and leave the encoder output in the block (written back once).
    @pl.when(l < pl.num_programs(1) - 1)
    def _():
        out_ref[...] = x2

    @pl.when(l == pl.num_programs(1) - 1)
    def _():
        out_ref[...] = _layer_norm_f32(x2, lnf_ref[0:1, :], lnf_ref[1:2, :])


# ----------------------------------------------------------------------------
# Wrapper
# ----------------------------------------------------------------------------

def _device_kind():
    try:
        return jax.devices()[0].device_kind.lower()
    except Exception:
        return ""


def prep_kernel_params(params):
    """Stack per-layer params along L, fuse QKV, cast matmul weights to bf16."""
    layers = params["layers"]

    def stack(key, dtype):
        return jnp.stack([lp[key] for lp in layers]).astype(dtype)

    wqkv = jnp.stack([jnp.concatenate([lp["wq"], lp["wk"], lp["wv"]], axis=1)
                      for lp in layers]).astype(jnp.bfloat16)          # (L, D, 3D)
    bqkv = jnp.stack([jnp.concatenate([lp["bq"], lp["bk"], lp["bv"]], axis=1)
                      for lp in layers]).astype(jnp.float32)           # (L, 1, 3D)
    ln1 = jnp.stack([jnp.concatenate([lp["ln1_g"], lp["ln1_b"]], axis=0)
                     for lp in layers]).astype(jnp.float32)            # (L, 2, D)
    ln2 = jnp.stack([jnp.concatenate([lp["ln2_g"], lp["ln2_b"]], axis=0)
                     for lp in layers]).astype(jnp.float32)            # (L, 2, D)
    return dict(
        ln1=ln1, wqkv=wqkv, bqkv=bqkv,
        wo=stack("wo", jnp.bfloat16), bo=stack("bo", jnp.float32),
        ln2=ln2,
        w1=stack("w1", jnp.bfloat16), b1=stack("b1", jnp.float32),
        w2=stack("w2", jnp.bfloat16), b2=stack("b2", jnp.float32),
        lnf=jnp.concatenate([params["ln_g"], params["ln_b"]], axis=0
                            ).astype(jnp.float32),                     # (2, D)
    )


def encoder_forward(src_tokens, src_mask_bool, params, *, d_model, n_head,
                    q_tile=256, batch_tiles=2):
    B, S = src_tokens.shape
    D = d_model
    L = len(params["layers"])
    dh = D // n_head

    # Batch tiling: amortize per-layer weight streaming over TB sequences while
    # keeping a parallel-shardable axis of extent >= 2 for v7x's two TCs.
    n_bt = batch_tiles if (B >= batch_tiles and B % batch_tiles == 0) else 1
    TB = B // n_bt

    # Query tile (>=256 keeps the MXU M-dim healthy on v6e/v7x; full-S if small).
    TQ = min(S, q_tile)
    if S % TQ != 0:
        TQ = S   # TODO(synk): ragged query tiling

    # Embedding gather + sqrt(d_model) scale + positional encoding: JAX glue.
    x = (params["embedding"][src_tokens] * (d_model ** 0.5)
         + params["pos_encode"][:S][None]).astype(jnp.float32)          # (B, S, D)

    # Additive key-padding bias, pre-divided by sqrt(dh) so that
    # (q/sqrt(dh)) @ k^T + bias == (masked_fill(-1e9) of q@k^T) / sqrt(dh).
    mask_bias = jnp.where(src_mask_bool,
                          jnp.float32(-1e9) / (dh ** 0.5),
                          jnp.float32(0.0))[:, None, :]                 # (B, 1, S)

    kp = prep_kernel_params(params)

    kind = _device_kind()
    is_v5 = "v5" in kind
    is_v7 = "v7" in kind
    # bf16 exp relieves the single EUP slot on v6e/v7x; v5e has no bf16 EUP path.
    exp_dtype = jnp.float32 if is_v5 else jnp.bfloat16
    # VMEM budget per chip (v7x has 64 MiB/TC physical; v5e/v6e have 128 MiB).
    vmem_limit = (40 if is_v7 else (96 if ("v5" in kind or "v6" in kind) else 48)
                  ) * 1024 * 1024
    # On v7x single-buffer the three large weight operands to fit realistic D.
    big_w_mode = pl.Buffered(1) if is_v7 else None

    def per_batch(shape):
        return pl.BlockSpec(shape, lambda bt, l: (bt, 0, 0))

    def per_layer(shape, pipeline_mode=None):
        if pipeline_mode is None:
            return pl.BlockSpec(shape, lambda bt, l: (l, 0, 0))
        return pl.BlockSpec(shape, lambda bt, l: (l, 0, 0),
                            pipeline_mode=pipeline_mode)

    in_specs = [
        per_batch((TB, 1, S)),                   # additive mask bias
        per_batch((TB, S, D)),                   # input activations (read at l==0)
        per_layer((1, 2, D)),                    # ln1 gamma/beta
        per_layer((1, D, 3 * D), big_w_mode),    # fused wq|wk|wv (bf16)
        per_layer((1, 1, 3 * D)),                # fused bq|bk|bv
        per_layer((1, D, D)),                    # wo (bf16)
        per_layer((1, 1, D)),                    # bo
        per_layer((1, 2, D)),                    # ln2 gamma/beta
        per_layer((1, D, 4 * D), big_w_mode),    # w1 (bf16)
        per_layer((1, 1, 4 * D)),                # b1
        per_layer((1, 4 * D, D), big_w_mode),    # w2 (bf16)
        per_layer((1, 1, D)),                    # b2
        pl.BlockSpec((2, D), lambda bt, l: (0, 0)),   # final LN gamma/beta
    ]

    # Output block doubles as the VMEM-resident residual stream (same block
    # index across the layer axis -> one HBM writeback per batch tile).
    # Output kept f32 to match the PyTorch module; D should be a multiple of
    # 128 in real models for unmasked lane-dense stores.
    return pl.pallas_call(
        functools.partial(encoder_stack_kernel, n_head=n_head, q_tile=TQ,
                          exp_dtype=exp_dtype),
        grid=(n_bt, L),
        in_specs=in_specs,
        out_specs=pl.BlockSpec((TB, S, D), lambda bt, l: (bt, 0, 0)),
        out_shape=jax.ShapeDtypeStruct((B, S, D), jnp.float32),
        compiler_params=pltpu.CompilerParams(
            dimension_semantics=("parallel", "arbitrary"),
            vmem_limit_bytes=vmem_limit),
    )(mask_bias, x, kp["ln1"], kp["wqkv"], kp["bqkv"], kp["wo"], kp["bo"],
      kp["ln2"], kp["w1"], kp["b1"], kp["w2"], kp["b2"], kp["lnf"])


# ----------------------------------------------------------------------------
# Deterministic parameter init + pure-JAX (f32) reference
# ----------------------------------------------------------------------------

def make_pos_encode(max_seq_len, d_model):
    pos = jnp.arange(max_seq_len, dtype=jnp.float32)[:, None]
    i = jnp.arange(d_model, dtype=jnp.float32)[None, :]
    angle = pos / jnp.power(10000.0, 2.0 * jnp.floor(i / 2.0) / d_model)
    even = (jnp.arange(d_model) % 2) == 0
    return jnp.where(even[None, :], jnp.sin(angle), jnp.cos(angle)).astype(jnp.float32)


def init_params(key, n_src_words, src_pdx, d_model, n_layers, max_seq_len):
    keys = jax.random.split(key, 2 + n_layers)
    emb = 0.02 * jax.random.normal(keys[0], (n_src_words, d_model), jnp.float32)
    emb = emb.at[src_pdx].set(0.0)   # padding_idx row is zero

    def linear(k, din, dout):
        k1, k2 = jax.random.split(k)
        w = 0.05 * jax.random.normal(k1, (din, dout), jnp.float32)   # [in, out]
        b = 0.01 * jax.random.normal(k2, (1, dout), jnp.float32)
        return w, b

    layers = []
    for li in range(n_layers):
        lk = jax.random.split(keys[2 + li], 6)
        wq, bq = linear(lk[0], d_model, d_model)
        wk, bk = linear(lk[1], d_model, d_model)
        wv, bv = linear(lk[2], d_model, d_model)
        wo, bo = linear(lk[3], d_model, d_model)
        w1, b1 = linear(lk[4], d_model, 4 * d_model)
        w2, b2 = linear(lk[5], 4 * d_model, d_model)
        layers.append(dict(
            ln1_g=jnp.ones((1, d_model), jnp.float32),
            ln1_b=jnp.zeros((1, d_model), jnp.float32),
            wq=wq, bq=bq, wk=wk, bk=bk, wv=wv, bv=bv, wo=wo, bo=bo,
            ln2_g=jnp.ones((1, d_model), jnp.float32),
            ln2_b=jnp.zeros((1, d_model), jnp.float32),
            w1=w1, b1=b1, w2=w2, b2=b2))
    return dict(embedding=emb, pos_encode=make_pos_encode(max_seq_len, d_model),
                layers=layers,
                ln_g=jnp.ones((1, d_model), jnp.float32),
                ln_b=jnp.zeros((1, d_model), jnp.float32))


def ref_encoder(src_tokens, src_mask_bool, params, *, d_model, n_head):
    def ln(v, g, b, eps=1e-5):
        mu = v.mean(-1, keepdims=True)
        var = ((v - mu) ** 2).mean(-1, keepdims=True)
        return (v - mu) / jnp.sqrt(var + eps) * g + b

    x = params["embedding"][src_tokens] * (d_model ** 0.5)
    x = x + params["pos_encode"][:src_tokens.shape[1]][None]
    B, S, D = x.shape
    dh = D // n_head
    for p in params["layers"]:
        xln = ln(x, p["ln1_g"], p["ln1_b"])
        q = (xln @ p["wq"] + p["bq"]).reshape(B, S, n_head, dh).transpose(0, 2, 1, 3)
        k = (xln @ p["wk"] + p["bk"]).reshape(B, S, n_head, dh).transpose(0, 2, 1, 3)
        v = (xln @ p["wv"] + p["bv"]).reshape(B, S, n_head, dh).transpose(0, 2, 1, 3)
        s = jnp.einsum("bhqd,bhkd->bhqk", q, k)
        s = jnp.where(src_mask_bool[:, None, None, :], -1e9, s)
        a = jax.nn.softmax(s / dh ** 0.5, axis=-1)
        o = jnp.einsum("bhqk,bhkd->bhqd", a, v).transpose(0, 2, 1, 3).reshape(B, S, D)
        x = x + (o @ p["wo"] + p["bo"])
        xln2 = ln(x, p["ln2_g"], p["ln2_b"])
        h = jnp.maximum(xln2 @ p["w1"] + p["b1"], 0.0)
        x = x + (h @ p["w2"] + p["b2"])
    return ln(x, params["ln_g"], params["ln_b"])


# ----------------------------------------------------------------------------

if __name__ == "__main__":
    B, S = 2, 8
    d_model, n_head, n_layers = 32, 4, 2
    n_src_words, src_pdx, max_seq_len = 50, 0, 64

    key = jax.random.PRNGKey(0)
    kparam, ktok = jax.random.split(key)
    params = init_params(kparam, n_src_words, src_pdx, d_model, n_layers, max_seq_len)

    src_tokens = jax.random.randint(ktok, (B, S), 1, n_src_words)
    src_tokens = src_tokens.at[0, 6:].set(src_pdx)
    src_tokens = src_tokens.at[1, 5:].set(src_pdx)
    src_mask = src_tokens == src_pdx                  # True at padding positions

    out = encoder_forward(src_tokens, src_mask, params,
                          d_model=d_model, n_head=n_head)
    out = jax.block_until_ready(out)

    ref = ref_encoder(src_tokens, src_mask, params, d_model=d_model, n_head=n_head)
    assert out.shape == (B, S, d_model)
    # bf16 MXU operands / bf16 exp (f32 accumulation) vs an all-f32 reference.
    max_err = float(jnp.max(jnp.abs(out - ref)))
    assert jnp.allclose(out, ref, rtol=2e-2, atol=2e-2), max_err

    print("KERNEL_OK")
</pallas_src>

<mosaic_0001>
module attributes {stable_mosaic.version = 11 : i64} {
  func.func @encoder_stack_kernel(%arg0: i32, %arg1: i32, %arg2: memref<1x1x8xf32, #tpu.memory_space<vmem>>, %arg3: memref<1x8x32xf32, #tpu.memory_space<vmem>>, %arg4: memref<1x2x32xf32, #tpu.memory_space<vmem>>, %arg5: memref<1x32x96xbf16, #tpu.memory_space<vmem>>, %arg6: memref<1x1x96xf32, #tpu.memory_space<vmem>>, %arg7: memref<1x32x32xbf16, #tpu.memory_space<vmem>>, %arg8: memref<1x1x32xf32, #tpu.memory_space<vmem>>, %arg9: memref<1x2x32xf32, #tpu.memory_space<vmem>>, %arg10: memref<1x32x128xbf16, #tpu.memory_space<vmem>>, %arg11: memref<1x1x128xf32, #tpu.memory_space<vmem>>, %arg12: memref<1x128x32xbf16, #tpu.memory_space<vmem>>, %arg13: memref<1x1x32xf32, #tpu.memory_space<vmem>>, %arg14: memref<2x32xf32, #tpu.memory_space<vmem>>, %arg15: memref<1x8x32xf32, #tpu.memory_space<vmem>>) attributes {dimension_semantics = [#tpu.dimension_semantics<parallel>, #tpu.dimension_semantics<arbitrary>], iteration_bounds = array<i64: 2, 2>, scalar_prefetch = 0 : i64, scratch_operands = 0 : i64, tpu.core_type = #tpu.core_type<tc>, window_params = [{transform_indices = @transform_0, window_bounds = array<i64: 1, 1, 8>}, {transform_indices = @transform_1, window_bounds = array<i64: 1, 8, 32>}, {transform_indices = @transform_2, window_bounds = array<i64: 1, 2, 32>}, {transform_indices = @transform_3, window_bounds = array<i64: 1, 32, 96>}, {transform_indices = @transform_4, window_bounds = array<i64: 1, 1, 96>}, {transform_indices = @transform_5, window_bounds = array<i64: 1, 32, 32>}, {transform_indices = @transform_6, window_bounds = array<i64: 1, 1, 32>}, {transform_indices = @transform_7, window_bounds = array<i64: 1, 2, 32>}, {transform_indices = @transform_8, window_bounds = array<i64: 1, 32, 128>}, {transform_indices = @transform_9, window_bounds = array<i64: 1, 1, 128>}, {transform_indices = @transform_10, window_bounds = array<i64: 1, 128, 32>}, {transform_indices = @transform_11, window_bounds = array<i64: 1, 1, 32>}, {pipeline_mode = #tpu.pipeline_mode<synchronous>, transform_indices = @transform_12, window_bounds = array<i64: 2, 32>}, {transform_indices = @transform_13, window_bounds = array<i64: 1, 8, 32>}]} {
    %c0_i32 = arith.constant 0 : i32
    %0 = arith.cmpi eq, %arg1, %c0_i32 : i32
    %1 = arith.extui %0 : i1 to i32
    %c0_i32_0 = arith.constant 0 : i32
    %2 = arith.cmpi ne, %1, %c0_i32_0 : i32
    scf.if %2 {
      %c0_69 = arith.constant 0 : index
      %c0_70 = arith.constant 0 : index
      %c0_71 = arith.constant 0 : index
      %148 = vector.load %arg3[%c0_69, %c0_70, %c0_71] : memref<1x8x32xf32, #tpu.memory_space<vmem>>, vector<1x8x32xf32>
      %c0_72 = arith.constant 0 : index
      %c0_73 = arith.constant 0 : index
      %c0_74 = arith.constant 0 : index
      %149 = vector.load %arg15[%c0_72, %c0_73, %c0_74] : memref<1x8x32xf32, #tpu.memory_space<vmem>>, vector<1x8x32xf32>
      tpu.vector_store %arg15[%c0_72, %c0_73, %c0_74], %148 {strides = array<i32>} : memref<1x8x32xf32, #tpu.memory_space<vmem>>, vector<1x8x32xf32>,
    } else {
    }
    %c0 = arith.constant 0 : index
    %c0_1 = arith.constant 0 : index
    %c0_2 = arith.constant 0 : index
    %3 = vector.load %arg15[%c0, %c0_1, %c0_2] : memref<1x8x32xf32, #tpu.memory_space<vmem>>, vector<1x8x32xf32>
    %c0_3 = arith.constant 0 : index
    %c0_4 = arith.constant 0 : index
    %c0_5 = arith.constant 0 : index
    %4 = vector.load %arg2[%c0_3, %c0_4, %c0_5] : memref<1x1x8xf32, #tpu.memory_space<vmem>>, vector<1x1x8xf32>
    %5 = vector.shape_cast %4 : vector<1x1x8xf32> to vector<1x1x1x8xf32>
    %c0_6 = arith.constant 0 : index
    %c0_7 = arith.constant 0 : index
    %c0_8 = arith.constant 0 : index
    %6 = vector.load %arg4[%c0_6, %c0_7, %c0_8] : memref<1x2x32xf32, #tpu.memory_space<vmem>>, vector<1x1x32xf32>
    %7 = vector.shape_cast %6 : vector<1x1x32xf32> to vector<1x32xf32>
    %c0_9 = arith.constant 0 : index
    %c1 = arith.constant 1 : index
    %c0_10 = arith.constant 0 : index
    %8 = vector.load %arg4[%c0_9, %c1, %c0_10] : memref<1x2x32xf32, #tpu.memory_space<vmem>>, vector<1x1x32xf32>
    %9 = vector.shape_cast %8 : vector<1x1x32xf32> to vector<1x32xf32>
    %cst = arith.constant dense<0.000000e+00> : vector<1x8xf32>
    %10 = vector.multi_reduction <add>, %3, %cst [2] : vector<1x8x32xf32> to vector<1x8xf32>
    %11 = vector.shape_cast %10 : vector<1x8xf32> to vector<1x8x1xf32>
    %cst_11 = arith.constant 3.200000e+01 : f32
    %12 = vector.broadcast %cst_11 : f32 to vector<1x8x1xf32>
    %13 = arith.divf %11, %12 : vector<1x8x1xf32>
    %14 = vector.broadcast %13 : vector<1x8x1xf32> to vector<1x8x32xf32>
    %15 = arith.subf %3, %14 : vector<1x8x32xf32>
    %16 = arith.mulf %15, %15 : vector<1x8x32xf32>
    %cst_12 = arith.constant dense<0.000000e+00> : vector<1x8xf32>
    %17 = vector.multi_reduction <add>, %16, %cst_12 [2] : vector<1x8x32xf32> to vector<1x8xf32>
    %18 = vector.shape_cast %17 : vector<1x8xf32> to vector<1x8x1xf32>
    %cst_13 = arith.constant 3.200000e+01 : f32
    %19 = vector.broadcast %cst_13 : f32 to vector<1x8x1xf32>
    %20 = arith.divf %18, %19 : vector<1x8x1xf32>
    %21 = vector.broadcast %13 : vector<1x8x1xf32> to vector<1x8x32xf32>
    %22 = arith.subf %3, %21 : vector<1x8x32xf32>
    %cst_14 = arith.constant 9.99999974E-6 : f32
    %23 = vector.broadcast %cst_14 : f32 to vector<1x8x1xf32>
    %24 = arith.addf %20, %23 : vector<1x8x1xf32>
    %25 = math.rsqrt %24 : vector<1x8x1xf32>
    %26 = vector.broadcast %25 : vector<1x8x1xf32> to vector<1x8x32xf32>
    %27 = arith.mulf %22, %26 : vector<1x8x32xf32>
    %28 = vector.shape_cast %7 : vector<1x32xf32> to vector<1x1x32xf32>
    %29 = vector.broadcast %28 : vector<1x1x32xf32> to vector<1x8x32xf32>
    %30 = arith.mulf %27, %29 : vector<1x8x32xf32>
    %31 = vector.shape_cast %9 : vector<1x32xf32> to vector<1x1x32xf32>
    %32 = vector.broadcast %31 : vector<1x1x32xf32> to vector<1x8x32xf32>
    %33 = arith.addf %30, %32 : vector<1x8x32xf32>
    %34 = arith.truncf %33 : vector<1x8x32xf32> to vector<1x8x32xbf16>
    %35 = vector.shape_cast %34 : vector<1x8x32xbf16> to vector<8x32xbf16>
    %c0_15 = arith.constant 0 : index
    %c0_16 = arith.constant 0 : index
    %c0_17 = arith.constant 0 : index
    %36 = vector.load %arg5[%c0_15, %c0_16, %c0_17] : memref<1x32x96xbf16, #tpu.memory_space<vmem>>, vector<1x32x96xbf16>
    %37 = vector.shape_cast %36 : vector<1x32x96xbf16> to vector<32x96xbf16>
    %cst_18 = arith.constant dense<0.000000e+00> : vector<8x96xf32>
    %38 = tpu.matmul %35, %37, %cst_18 {dimension_numbers = #tpu.dot_dimension_numbers<[1], [0], [0], [1], [0, 0, 1, 1], [], []>} : vector<8x32xbf16>, vector<32x96xbf16>, vector<8x96xf32> -> vector<8x96xf32>
    %c0_19 = arith.constant 0 : index
    %c0_20 = arith.constant 0 : index
    %c0_21 = arith.constant 0 : index
    %39 = vector.load %arg6[%c0_19, %c0_20, %c0_21] : memref<1x1x96xf32, #tpu.memory_space<vmem>>, vector<1x1x96xf32>
    %40 = vector.shape_cast %39 : vector<1x1x96xf32> to vector<1x96xf32>
    %41 = vector.broadcast %40 : vector<1x96xf32> to vector<8x96xf32>
    %42 = arith.addf %38, %41 : vector<8x96xf32>
    %43 = vector.extract_strided_slice %42 {offsets = [0, 0], sizes = [8, 32], strides = [1, 1]} : vector<8x96xf32> to vector<8x32xf32>
    %cst_22 = arith.constant 0.353553385 : f32
    %44 = vector.broadcast %cst_22 : f32 to vector<8x32xf32>
    %45 = arith.mulf %43, %44 : vector<8x32xf32>
    %46 = vector.extract_strided_slice %42 {offsets = [0, 32], sizes = [8, 32], strides = [1, 1]} : vector<8x96xf32> to vector<8x32xf32>
    %47 = vector.extract_strided_slice %42 {offsets = [0, 64], sizes = [8, 32], strides = [1, 1]} : vector<8x96xf32> to vector<8x32xf32>
    %48 = vector.shape_cast %45 : vector<8x32xf32> to vector<1x8x4x8xf32>
    %49 = tpu.transpose %48, [0, 2, 1, 3] : vector<1x8x4x8xf32> -> vector<1x4x8x8xf32>
    %50 = vector.shape_cast %49 : vector<1x4x8x8xf32> to vector<4x8x8xf32>
    %51 = arith.truncf %50 : vector<4x8x8xf32> to vector<4x8x8xbf16>
    %52 = vector.shape_cast %46 : vector<8x32xf32> to vector<1x8x4x8xf32>
    %53 = tpu.transpose %52, [0, 2, 1, 3] : vector<1x8x4x8xf32> -> vector<1x4x8x8xf32>
    %54 = vector.shape_cast %53 : vector<1x4x8x8xf32> to vector<4x8x8xf32>
    %55 = arith.truncf %54 : vector<4x8x8xf32> to vector<4x8x8xbf16>
    %56 = vector.shape_cast %47 : vector<8x32xf32> to vector<1x8x4x8xf32>
    %57 = tpu.transpose %56, [0, 2, 1, 3] : vector<1x8x4x8xf32> -> vector<1x4x8x8xf32>
    %58 = vector.shape_cast %57 : vector<1x4x8x8xf32> to vector<4x8x8xf32>
    %59 = arith.truncf %58 : vector<4x8x8xf32> to vector<4x8x8xbf16>
    %cst_23 = arith.constant dense<0.000000e+00> : vector<4x8x8xf32>
    %60 = tpu.matmul %51, %55, %cst_23 {dimension_numbers = #tpu.dot_dimension_numbers<[2], [2], [1], [1], [0, 0, 0, 1, 1, 1], [0], [0]>} : vector<4x8x8xbf16>, vector<4x8x8xbf16>, vector<4x8x8xf32> -> vector<4x8x8xf32>
    %61 = vector.shape_cast %60 : vector<4x8x8xf32> to vector<1x4x8x8xf32>
    %62 = vector.broadcast %5 : vector<1x1x1x8xf32> to vector<1x4x8x8xf32>
    %63 = arith.addf %61, %62 : vector<1x4x8x8xf32>
    %cst_24 = arith.constant dense<0xFF800000> : vector<1x4x8xf32>
    %64 = vector.multi_reduction <maximumf>, %63, %cst_24 [3] : vector<1x4x8x8xf32> to vector<1x4x8xf32>
    %65 = vector.shape_cast %64 : vector<1x4x8xf32> to vector<1x4x8x1xf32>
    %66 = vector.broadcast %65 : vector<1x4x8x1xf32> to vector<1x4x8x8xf32>
    %67 = arith.subf %63, %66 : vector<1x4x8x8xf32>
    %68 = arith.truncf %67 : vector<1x4x8x8xf32> to vector<1x4x8x8xbf16>
    %69 = math.exp %68 : vector<1x4x8x8xbf16>
    %70 = arith.extf %69 : vector<1x4x8x8xbf16> to vector<1x4x8x8xf32>
    %cst_25 = arith.constant dense<0.000000e+00> : vector<1x4x8xf32>
    %71 = vector.multi_reduction <add>, %70, %cst_25 [3] : vector<1x4x8x8xf32> to vector<1x4x8xf32>
    %72 = vector.shape_cast %71 : vector<1x4x8xf32> to vector<1x4x8x1xf32>
    %73 = tpu.reciprocal %72 {approx = true} : vector<1x4x8x1xf32> -> vector<1x4x8x1xf32>
    %74 = vector.shape_cast %69 : vector<1x4x8x8xbf16> to vector<4x8x8xbf16>
    %cst_26 = arith.constant dense<0.000000e+00> : vector<4x8x8xf32>
    %75 = tpu.matmul %74, %59, %cst_26 {dimension_numbers = #tpu.dot_dimension_numbers<[2], [1], [1], [2], [0, 0, 0, 1, 1, 2], [0], [0]>} : vector<4x8x8xbf16>, vector<4x8x8xbf16>, vector<4x8x8xf32> -> vector<4x8x8xf32>
    %76 = vector.shape_cast %75 : vector<4x8x8xf32> to vector<1x4x8x8xf32>
    %77 = vector.broadcast %73 : vector<1x4x8x1xf32> to vector<1x4x8x8xf32>
    %78 = arith.mulf %76, %77 : vector<1x4x8x8xf32>
    %79 = tpu.transpose %78, [0, 2, 1, 3] : vector<1x4x8x8xf32> -> vector<1x8x4x8xf32>
    %80 = vector.shape_cast %79 : vector<1x8x4x8xf32> to vector<8x32xf32>
    %81 = arith.truncf %80 : vector<8x32xf32> to vector<8x32xbf16>
    %c0_27 = arith.constant 0 : index
    %c0_28 = arith.constant 0 : index
    %c0_29 = arith.constant 0 : index
    %82 = vector.load %arg7[%c0_27, %c0_28, %c0_29] : memref<1x32x32xbf16, #tpu.memory_space<vmem>>, vector<1x32x32xbf16>
    %83 = vector.shape_cast %82 : vector<1x32x32xbf16> to vector<32x32xbf16>
    %cst_30 = arith.constant dense<0.000000e+00> : vector<8x32xf32>
    %84 = tpu.matmul %81, %83, %cst_30 {dimension_numbers = #tpu.dot_dimension_numbers<[1], [0], [0], [1], [0, 0, 1, 1], [], []>} : vector<8x32xbf16>, vector<32x32xbf16>, vector<8x32xf32> -> vector<8x32xf32>
    %c0_31 = arith.constant 0 : index
    %c0_32 = arith.constant 0 : index
    %c0_33 = arith.constant 0 : index
    %85 = vector.load %arg8[%c0_31, %c0_32, %c0_33] : memref<1x1x32xf32, #tpu.memory_space<vmem>>, vector<1x1x32xf32>
    %86 = vector.shape_cast %85 : vector<1x1x32xf32> to vector<1x32xf32>
    %87 = vector.broadcast %86 : vector<1x32xf32> to vector<8x32xf32>
    %88 = arith.addf %84, %87 : vector<8x32xf32>
    %89 = vector.shape_cast %88 : vector<8x32xf32> to vector<1x8x32xf32>
    %90 = arith.addf %3, %89 : vector<1x8x32xf32>
    %c0_34 = arith.constant 0 : index
    %c0_35 = arith.constant 0 : index
    %c0_36 = arith.constant 0 : index
    %91 = vector.load %arg15[%c0_34, %c0_35, %c0_36] : memref<1x8x32xf32, #tpu.memory_space<vmem>>, vector<1x8x32xf32>
    tpu.vector_store %arg15[%c0_34, %c0_35, %c0_36], %90 {strides = array<i32>} : memref<1x8x32xf32, #tpu.memory_space<vmem>>, vector<1x8x32xf32>,
    %c0_37 = arith.constant 0 : index
    %c0_38 = arith.constant 0 : index
    %c0_39 = arith.constant 0 : index
    %92 = vector.load %arg15[%c0_37, %c0_38, %c0_39] : memref<1x8x32xf32, #tpu.memory_space<vmem>>, vector<1x8x32xf32>
    %c0_40 = arith.constant 0 : index
    %c0_41 = arith.constant 0 : index
    %c0_42 = arith.constant 0 : index
    %93 = vector.load %arg9[%c0_40, %c0_41, %c0_42] : memref<1x2x32xf32, #tpu.memory_space<vmem>>, vector<1x1x32xf32>
    %94 = vector.shape_cast %93 : vector<1x1x32xf32> to vector<1x32xf32>
    %c0_43 = arith.constant 0 : index
    %c1_44 = arith.constant 1 : index
    %c0_45 = arith.constant 0 : index
    %95 = vector.load %arg9[%c0_43, %c1_44, %c0_45] : memref<1x2x32xf32, #tpu.memory_space<vmem>>, vector<1x1x32xf32>
    %96 = vector.shape_cast %95 : vector<1x1x32xf32> to vector<1x32xf32>
    %cst_46 = arith.constant dense<0.000000e+00> : vector<1x8xf32>
    %97 = vector.multi_reduction <add>, %92, %cst_46 [2] : vector<1x8x32xf32> to vector<1x8xf32>
    %98 = vector.shape_cast %97 : vector<1x8xf32> to vector<1x8x1xf32>
    %cst_47 = arith.constant 3.200000e+01 : f32
    %99 = vector.broadcast %cst_47 : f32 to vector<1x8x1xf32>
    %100 = arith.divf %98, %99 : vector<1x8x1xf32>
    %101 = vector.broadcast %100 : vector<1x8x1xf32> to vector<1x8x32xf32>
    %102 = arith.subf %92, %101 : vector<1x8x32xf32>
    %103 = arith.mulf %102, %102 : vector<1x8x32xf32>
    %cst_48 = arith.constant dense<0.000000e+00> : vector<1x8xf32>
    %104 = vector.multi_reduction <add>, %103, %cst_48 [2] : vector<1x8x32xf32> to vector<1x8xf32>
    %105 = vector.shape_cast %104 : vector<1x8xf32> to vector<1x8x1xf32>
    %cst_49 = arith.constant 3.200000e+01 : f32
    %106 = vector.broadcast %cst_49 : f32 to vector<1x8x1xf32>
    %107 = arith.divf %105, %106 : vector<1x8x1xf32>
    %108 = vector.broadcast %100 : vector<1x8x1xf32> to vector<1x8x32xf32>
    %109 = arith.subf %92, %108 : vector<1x8x32xf32>
    %cst_50 = arith.constant 9.99999974E-6 : f32
    %110 = vector.broadcast %cst_50 : f32 to vector<1x8x1xf32>
    %111 = arith.addf %107, %110 : vector<1x8x1xf32>
    %112 = math.rsqrt %111 : vector<1x8x1xf32>
    %113 = vector.broadcast %112 : vector<1x8x1xf32> to vector<1x8x32xf32>
    %114 = arith.mulf %109, %113 : vector<1x8x32xf32>
    %115 = vector.shape_cast %94 : vector<1x32xf32> to vector<1x1x32xf32>
    %116 = vector.broadcast %115 : vector<1x1x32xf32> to vector<1x8x32xf32>
    %117 = arith.mulf %114, %116 : vector<1x8x32xf32>
    %118 = vector.shape_cast %96 : vector<1x32xf32> to vector<1x1x32xf32>
    %119 = vector.broadcast %118 : vector<1x1x32xf32> to vector<1x8x32xf32>
    %120 = arith.addf %117, %119 : vector<1x8x32xf32>
    %121 = arith.truncf %120 : vector<1x8x32xf32> to vector<1x8x32xbf16>
    %122 = vector.shape_cast %121 : vector<1x8x32xbf16> to vector<8x32xbf16>
    %c0_51 = arith.constant 0 : index
    %c0_52 = arith.constant 0 : index
    %c0_53 = arith.constant 0 : index
    %123 = vector.load %arg10[%c0_51, %c0_52, %c0_53] : memref<1x32x128xbf16, #tpu.memory_space<vmem>>, vector<1x32x128xbf16>
    %124 = vector.shape_cast %123 : vector<1x32x128xbf16> to vector<32x128xbf16>
    %cst_54 = arith.constant dense<0.000000e+00> : vector<8x128xf32>
    %125 = tpu.matmul %122, %124, %cst_54 {dimension_numbers = #tpu.dot_dimension_numbers<[1], [0], [0], [1], [0, 0, 1, 1], [], []>} : vector<8x32xbf16>, vector<32x128xbf16>, vector<8x128xf32> -> vector<8x128xf32>
    %c0_55 = arith.constant 0 : index
    %c0_56 = arith.constant 0 : index
    %c0_57 = arith.constant 0 : index
    %126 = vector.load %arg11[%c0_55, %c0_56, %c0_57] : memref<1x1x128xf32, #tpu.memory_space<vmem>>, vector<1x1x128xf32>
    %127 = vector.shape_cast %126 : vector<1x1x128xf32> to vector<1x128xf32>
    %128 = vector.broadcast %127 : vector<1x128xf32> to vector<8x128xf32>
    %129 = arith.addf %125, %128 : vector<8x128xf32>
    %cst_58 = arith.constant 0.000000e+00 : f32
    %130 = vector.broadcast %cst_58 : f32 to vector<8x128xf32>
    %131 = arith.maximumf %129, %130 : vector<8x128xf32>
    %132 = arith.truncf %131 : vector<8x128xf32> to vector<8x128xbf16>
    %c0_59 = arith.constant 0 : index
    %c0_60 = arith.constant 0 : index
    %c0_61 = arith.constant 0 : index
    %133 = vector.load %arg12[%c0_59, %c0_60, %c0_61] : memref<1x128x32xbf16, #tpu.memory_space<vmem>>, vector<1x128x32xbf16>
    %134 = vector.shape_cast %133 : vector<1x128x32xbf16> to vector<128x32xbf16>
    %cst_62 = arith.constant dense<0.000000e+00> : vector<8x32xf32>
    %135 = tpu.matmul %132, %134, %cst_62 {dimension_numbers = #tpu.dot_dimension_numbers<[1], [0], [0], [1], [0, 0, 1, 1], [], []>} : vector<8x128xbf16>, vector<128x32xbf16>, vector<8x32xf32> -> vector<8x32xf32>
    %c0_63 = arith.constant 0 : index
    %c0_64 = arith.constant 0 : index
    %c0_65 = arith.constant 0 : index
    %136 = vector.load %arg13[%c0_63, %c0_64, %c0_65] : memref<1x1x32xf32, #tpu.memory_space<vmem>>, vector<1x1x32xf32>
    %137 = vector.shape_cast %136 : vector<1x1x32xf32> to vector<1x32xf32>
    %138 = vector.broadcast %137 : vector<1x32xf32> to vector<8x32xf32>
    %139 = arith.addf %135, %138 : vector<8x32xf32>
    %140 = vector.shape_cast %139 : vector<8x32xf32> to vector<1x8x32xf32>
    %141 = arith.addf %92, %140 : vector<1x8x32xf32>
    %c1_i32 = arith.constant 1 : i32
    %142 = arith.cmpi slt, %arg1, %c1_i32 : i32
    %143 = arith.extui %142 : i1 to i32
    %c0_i32_66 = arith.constant 0 : i32
    %144 = arith.cmpi ne, %143, %c0_i32_66 : i32
    scf.if %144 {
      %c0_69 = arith.constant 0 : index
      %c0_70 = arith.constant 0 : index
      %c0_71 = arith.constant 0 : index
      %148 = vector.load %arg15[%c0_69, %c0_70, %c0_71] : memref<1x8x32xf32, #tpu.memory_space<vmem>>, vector<1x8x32xf32>
      tpu.vector_store %arg15[%c0_69, %c0_70, %c0_71], %141 {strides = array<i32>} : memref<1x8x32xf32, #tpu.memory_space<vmem>>, vector<1x8x32xf32>,
    } else {
    }
    %c1_i32_67 = arith.constant 1 : i32
    %145 = arith.cmpi eq, %arg1, %c1_i32_67 : i32
    %146 = arith.extui %145 : i1 to i32
    %c0_i32_68 = arith.constant 0 : i32
    %147 = arith.cmpi ne, %146, %c0_i32_68 : i32
    scf.if %147 {
      %c0_69 = arith.constant 0 : index
      %c0_70 = arith.constant 0 : index
      %148 = vector.load %arg14[%c0_69, %c0_70] : memref<2x32xf32, #tpu.memory_space<vmem>>, vector<1x32xf32>
      %c1_71 = arith.constant 1 : index
      %c0_72 = arith.constant 0 : index
      %149 = vector.load %arg14[%c1_71, %c0_72] : memref<2x32xf32, #tpu.memory_space<vmem>>, vector<1x32xf32>
      %cst_73 = arith.constant dense<0.000000e+00> : vector<1x8xf32>
      %150 = vector.multi_reduction <add>, %141, %cst_73 [2] : vector<1x8x32xf32> to vector<1x8xf32>
      %151 = vector.shape_cast %150 : vector<1x8xf32> to vector<1x8x1xf32>
      %cst_74 = arith.constant 3.200000e+01 : f32
      %152 = vector.broadcast %cst_74 : f32 to vector<1x8x1xf32>
      %153 = arith.divf %151, %152 : vector<1x8x1xf32>
      %154 = vector.broadcast %153 : vector<1x8x1xf32> to vector<1x8x32xf32>
      %155 = arith.subf %141, %154 : vector<1x8x32xf32>
      %156 = arith.mulf %155, %155 : vector<1x8x32xf32>
      %cst_75 = arith.constant dense<0.000000e+00> : vector<1x8xf32>
      %157 = vector.multi_reduction <add>, %156, %cst_75 [2] : vector<1x8x32xf32> to vector<1x8xf32>
      %158 = vector.shape_cast %157 : vector<1x8xf32> to vector<1x8x1xf32>
      %cst_76 = arith.constant 3.200000e+01 : f32
      %159 = vector.broadcast %cst_76 : f32 to vector<1x8x1xf32>
      %160 = arith.divf %158, %159 : vector<1x8x1xf32>
      %161 = vector.broadcast %153 : vector<1x8x1xf32> to vector<1x8x32xf32>
      %162 = arith.subf %141, %161 : vector<1x8x32xf32>
      %cst_77 = arith.constant 9.99999974E-6 : f32
      %163 = vector.broadcast %cst_77 : f32 to vector<1x8x1xf32>
      %164 = arith.addf %160, %163 : vector<1x8x1xf32>
      %165 = math.rsqrt %164 : vector<1x8x1xf32>
      %166 = vector.broadcast %165 : vector<1x8x1xf32> to vector<1x8x32xf32>
      %167 = arith.mulf %162, %166 : vector<1x8x32xf32>
      %168 = vector.shape_cast %148 : vector<1x32xf32> to vector<1x1x32xf32>
      %169 = vector.broadcast %168 : vector<1x1x32xf32> to vector<1x8x32xf32>
      %170 = arith.mulf %167, %169 : vector<1x8x32xf32>
      %171 = vector.shape_cast %149 : vector<1x32xf32> to vector<1x1x32xf32>
      %172 = vector.broadcast %171 : vector<1x1x32xf32> to vector<1x8x32xf32>
      %173 = arith.addf %170, %172 : vector<1x8x32xf32>
      %c0_78 = arith.constant 0 : index
      %c0_79 = arith.constant 0 : index
      %c0_80 = arith.constant 0 : index
      %174 = vector.load %arg15[%c0_78, %c0_79, %c0_80] : memref<1x8x32xf32, #tpu.memory_space<vmem>>, vector<1x8x32xf32>
      tpu.vector_store %arg15[%c0_78, %c0_79, %c0_80], %173 {strides = array<i32>} : memref<1x8x32xf32, #tpu.memory_space<vmem>>, vector<1x8x32xf32>,
    } else {
    }
    return
  }
  func.func @transform_0(%arg0: i32, %arg1: i32) -> (i32, i32, i32) {
    %c0_i32 = arith.constant 0 : i32
    %c0_i32_0 = arith.constant 0 : i32
    %c0_i32_1 = arith.constant 0 : i32
    return %arg0, %c0_i32, %c0_i32_0 : i32, i32, i32
  }
  func.func @transform_1(%arg0: i32, %arg1: i32) -> (i32, i32, i32) {
    %c0_i32 = arith.constant 0 : i32
    %c0_i32_0 = arith.constant 0 : i32
    %c0_i32_1 = arith.constant 0 : i32
    return %arg0, %c0_i32, %c0_i32_0 : i32, i32, i32
  }
  func.func @transform_2(%arg0: i32, %arg1: i32) -> (i32, i32, i32) {
    %c0_i32 = arith.constant 0 : i32
    %c0_i32_0 = arith.constant 0 : i32
    %c0_i32_1 = arith.constant 0 : i32
    return %arg1, %c0_i32, %c0_i32_0 : i32, i32, i32
  }
  func.func @transform_3(%arg0: i32, %arg1: i32) -> (i32, i32, i32) {
    %c0_i32 = arith.constant 0 : i32
    %c0_i32_0 = arith.constant 0 : i32
    %c0_i32_1 = arith.constant 0 : i32
    return %arg1, %c0_i32, %c0_i32_0 : i32, i32, i32
  }
  func.func @transform_4(%arg0: i32, %arg1: i32) -> (i32, i32, i32) {
    %c0_i32 = arith.constant 0 : i32
    %c0_i32_0 = arith.constant 0 : i32
    %c0_i32_1 = arith.constant 0 : i32
    return %arg1, %c0_i32, %c0_i32_0 : i32, i32, i32
  }
  func.func @transform_5(%arg0: i32, %arg1: i32) -> (i32, i32, i32) {
    %c0_i32 = arith.constant 0 : i32
    %c0_i32_0 = arith.constant 0 : i32
    %c0_i32_1 = arith.constant 0 : i32
    return %arg1, %c0_i32, %c0_i32_0 : i32, i32, i32
  }
  func.func @transform_6(%arg0: i32, %arg1: i32) -> (i32, i32, i32) {
    %c0_i32 = arith.constant 0 : i32
    %c0_i32_0 = arith.constant 0 : i32
    %c0_i32_1 = arith.constant 0 : i32
    return %arg1, %c0_i32, %c0_i32_0 : i32, i32, i32
  }
  func.func @transform_7(%arg0: i32, %arg1: i32) -> (i32, i32, i32) {
    %c0_i32 = arith.constant 0 : i32
    %c0_i32_0 = arith.constant 0 : i32
    %c0_i32_1 = arith.constant 0 : i32
    return %arg1, %c0_i32, %c0_i32_0 : i32, i32, i32
  }
  func.func @transform_8(%arg0: i32, %arg1: i32) -> (i32, i32, i32) {
    %c0_i32 = arith.constant 0 : i32
    %c0_i32_0 = arith.constant 0 : i32
    %c0_i32_1 = arith.constant 0 : i32
    return %arg1, %c0_i32, %c0_i32_0 : i32, i32, i32
  }
  func.func @transform_9(%arg0: i32, %arg1: i32) -> (i32, i32, i32) {
    %c0_i32 = arith.constant 0 : i32
    %c0_i32_0 = arith.constant 0 : i32
    %c0_i32_1 = arith.constant 0 : i32
    return %arg1, %c0_i32, %c0_i32_0 : i32, i32, i32
  }
  func.func @transform_10(%arg0: i32, %arg1: i32) -> (i32, i32, i32) {
    %c0_i32 = arith.constant 0 : i32
    %c0_i32_0 = arith.constant 0 : i32
    %c0_i32_1 = arith.constant 0 : i32
    return %arg1, %c0_i32, %c0_i32_0 : i32, i32, i32
  }
  func.func @transform_11(%arg0: i32, %arg1: i32) -> (i32, i32, i32) {
    %c0_i32 = arith.constant 0 : i32
    %c0_i32_0 = arith.constant 0 : i32
    %c0_i32_1 = arith.constant 0 : i32
    return %arg1, %c0_i32, %c0_i32_0 : i32, i32, i32
  }
  func.func @transform_12(%arg0: i32, %arg1: i32) -> (i32, i32) {
    %c0_i32 = arith.constant 0 : i32
    %c0_i32_0 = arith.constant 0 : i32
    %c0_i32_1 = arith.constant 0 : i32
    return %c0_i32, %c0_i32_0 : i32, i32
  }
  func.func @transform_13(%arg0: i32, %arg1: i32) -> (i32, i32, i32) {
    %c0_i32 = arith.constant 0 : i32
    %c0_i32_0 = arith.constant 0 : i32
    %c0_i32_1 = arith.constant 0 : i32
    return %arg0, %c0_i32, %c0_i32_0 : i32, i32, i32
  }
}

</mosaic_0001>

<bundles_post_ra>
// kernel: tpu_custom_call.1
= control target key start
LH: loop header
LB: loop body
LE: loop exit
PB: predicated region body
PF: predicated region fallthrough
CT: control target
= control target key end

     0   :  { %s3234_s0 = inlined_call_operand.vmem [shape: f32[2,1,8], index: 0, kind: input, shape index: {}]   ;;  %s3235_s1 = inlined_call_operand.vmem [shape: f32[2,8,32], index: 1, kind: input, shape index: {}]   ;;  %s3236_s2 = inlined_call_operand.vmem [shape: f32[2,2,32], index: 2, kind: input, shape index: {}]   ;;  %s3237_s3 = inlined_call_operand.vmem [shape: bf16[2,32,96], index: 3, kind: input, shape index: {}]   ;;  %s3238_s4 = inlined_call_operand.vmem [shape: f32[2,1,96], index: 4, kind: input, shape index: {}]   ;;  %s3239_s5 = inlined_call_operand.vmem [shape: bf16[2,32,32], index: 5, kind: input, shape index: {}]   ;;  %s3240_s6 = inlined_call_operand.vmem [shape: f32[2,1,32], index: 6, kind: input, shape index: {}]   ;;  %s3241_s7 = inlined_call_operand.vmem [shape: f32[2,2,32], index: 7, kind: input, shape index: {}]   ;;  %s3242_s8 = inlined_call_operand.vmem [shape: bf16[2,32,128], index: 8, kind: input, shape index: {}]   ;;  %s3243_s9 = inlined_call_operand.vmem [shape: f32[2,1,128], index: 9, kind: input, shape index: {}]   ;;  %s3244_s10 = inlined_call_operand.vmem [shape: bf16[2,128,32], index: 10, kind: input, shape index: {}]   ;;  %s3245_s11 = inlined_call_operand.vmem [shape: f32[2,1,32], index: 11, kind: input, shape index: {}]   ;;  %s3246_s12 = inlined_call_operand.vmem [shape: f32[2,32], index: 12, kind: input, shape index: {}]   ;;  %s3247_s13 = inlined_call_operand.hbm [shape: f32[2,8,32], index: 13, kind: output, shape index: {}]  }
   0x1   :  { %3264 = sst [smem:[#allocation18_spill]] %s3234_s0 }
   0x2   :  { %3265 = sst [smem:[#allocation19_spill]] %s3235_s1 }
   0x3   :  { %3266 = sst [smem:[#allocation20_spill]] %s3236_s2 }
   0x4   :  { %3267 = sst [smem:[#allocation21_spill]] %s3237_s3 }
   0x5   :  { %3268 = sst [smem:[#allocation22_spill]] %s3239_s5 }
   0x6   :  { %3269 = sst [smem:[#allocation23_spill]] %s3246_s12 }
   0x7   :  { %3270 = sst [smem:[#allocation24_spill]] %s3247_s13 }
   0x8   :  { %18 = vsyncpa [#allocation3], 0 }
   0x9   :  { %20 = vsyncpa [#allocation3 + $0x1], 0  ;;  %s2795_s25 = smov 0   ;;  %s2797_s26 = smov 0  }
   0xa   :  { %s2799_s27 = smov 0   ;;  %s2801_s28 = smov 0  }
   0xb   :  { %s2803_s29 = smov 0   ;;  %s2805_s30 = smov 0  }
   0xc   :  { %s2807_s14 = smov 0   ;;  %s2809_s15 = smov 0  }
   0xd LB: > { %3271 = sst [smem:[#allocation5_spill]] %s2682_s25  ;;  %s2299_s16 = sadd.s32 4294967295, %s2710_s15   ;;  %s2710_s15 = sphi %s2809_s15, %s26_s15   ;;  %s2706_s14 = sphi %s2807_s14, %s3313_s14   ;;  %s2702_s30 = sphi %s2805_s30, %s3312_s30   ;;  %s2698_s29 = sphi %s2803_s29, %s3311_s29   ;;  %s2694_s28 = sphi %s2801_s28, %s3310_s28   ;;  %s2690_s27 = sphi %s2799_s27, %s3309_s27   ;;  %s2686_s26 = sphi %s2797_s26, %s3308_s26   ;;  %s2682_s25 = sphi %s2795_s25, %s3307_s25  }
   0xe   : > { %3272 = sst [smem:[#allocation6_spill]] %s2686_s26  ;;  %s2300_s17 = sadd.s32 4294967294, %s2710_s15  }
   0xf   : > { %3273 = sst [smem:[#allocation7_spill]] %s2690_s27  ;;  %s35_s18 = sadd.s32 1, %s2702_s30 }
  0x10   : > { %3274 = sst [smem:[#allocation8_spill]] %s2698_s29  ;;  %p36_p0 = scmp.ge.s32.totalorder %s35_s18, 2 }
  0x11   : > { %3275 = sst [smem:[#allocation9_spill]] %s2702_s30  ;;  %s38_s19 = sadd.s32 1, %s2706_s14 }
  0x12   : > { %3276 = sst [smem:[#allocation10_spill]] %s2706_s14  ;;  %p388_p1 = scmp.ne.s32.totalorder %s2690_s27, %s2686_s26 }
  0x13   : > { %3277 = sst [smem:[#allocation11_spill]] %s2710_s15  ;;  %p389_p2 = scmp.eq.s32.totalorder %s2299_s16, 3 }
  0x14   : > { %s3315_s18 = smov (%p36_p0, %s35_s18), 0  ;;  %s3317_s19 = smov (!%p36_p0, %s38_s19), %s2706_s14 }
  0x15   : > { %3278 = sst [smem:[#allocation12_spill]] %s3315_s18  ;;  %p2844_p3 = por %p389_p2, %p388_p1 }
  0x16   : > { %p394_p4 = scmp.ne.s32.totalorder %s2686_s26, %s2682_s25  ;;  %p40_p5 = scmp.ge.s32.totalorder %s3317_s19, 2 }
  0x17   : > { %s3279_s20 = scalar_select %p2844_p3, 1, 0 }
  0x18   : > { %p395_p6 = scmp.eq.s32.totalorder %s2300_s17, 3  ;;  %p2303_p7 = scmp.ge.s32.totalorder %s2710_s15, 1 }
  0x19   : > { %3280 = sst [smem:[#allocation13_spill]] %s3279_s20  ;;  %p499_p8 = scmp.lt.s32.totalorder %s2710_s15, 5 }
  0x1a   : > { %s3319_s19 = smov (%p40_p5, %s3317_s19), 0  ;;  %p2854_p9 = por %p395_p6, %p394_p4 }
  0x1b   : > { %3281 = sst [smem:[#allocation14_spill]] %s3319_s19  ;;  %p500_p10 = pnand %p2303_p7, %p499_p8 }
  0x1c   : > { %s3282_s21 = scalar_select %p2854_p9, 1, 0 }
  0x1d   : > { %s375_s22 = ssub.s32 %s2706_s14, %s3319_s19  ;;  %s378_s23 = sadd.s32 1, %s2690_s27 }
  0x1e   : > { %3283 = sst [smem:[#allocation15_spill]] %s3282_s21  ;;  %p376_p11 = scmp.eq.s32.totalorder %s375_s22, 0 }
  0x1f   : > { %503 = sbr.rel (%p500_p10) target bundleno = 2962 (0xb92), region = 72 }
  0x20   : > { %s2862_s24 = scalar_select %p376_p11, %s2690_s27, %s378_s23  }
  0x22   : > { %3284 = sst [smem:[#allocation16_spill]] %s2862_s24 }
  0x26   : > { %s3251_s16 = sand.u32 1, %s2686_s26   ;;  %p585_p12 = scmp.lt.s32.totalorder %s2698_s29, 1 }
  0x27   : > { %s2304_s17 = sshll.u32 %s3251_s16, 3  ;;  %p592_p13 = scmp.lt.s32.totalorder %s2694_s28, 1 }
  0x28   : > { %s2870_s18 = scalar_select %p585_p12, %s2698_s29, 1 }
  0x29   : > { %s2873_s19 = scalar_select %p592_p13, %s2694_s28, 1 }
  0x2a   : > { %3285 = sst [smem:[#allocation17_spill]] %s2870_s18  ;;  %s2305_s30 = sshll.u32 %s2870_s18, 3 }
  0x2b   : > { %s3287_s1 = sld [smem:[#allocation19_spill]]  ;;  %s2306_s21 = sshll.u32 %s2873_s19, 1 }
  0x2c   : > { %s3288_s2 = sld [smem:[#allocation20_spill]]  ;;  %s2367_s22 = sshll.u32 %s2873_s19, 4 }
  0x2d   : > { %s3289_s3 = sld [smem:[#allocation21_spill]]  ;;  %s3290_s5 = sld [smem:[#allocation22_spill]] }
  0x2e   : > { %s623_s0 = scalar_lea.vmem %s3243_s9, %s2873_s19  ;;  %s2370_s18 = sshll.u32 %s2873_s19, 6 }
  0x2f   : > { %s2926_s24 = scalar_lea.vmem %s3244_s10, %s2370_s18  ;;  %p2316_p0 = scmp.ne.s32.totalorder %s2694_s28, 0 }
  0x30   : > { %vm638_vm0 = vcmask (!%p2316_p0), 261120  }
  0x31   : > { %s591_s27 = scalar_lea.vmem %s3287_s1, %s2305_s30  ;;  %s631_s1 = scalar_lea.vmem %s3245_s11, %s2873_s19 }
  0x32   : > { %s2887_s13 = scalar_lea.vmem %s3288_s2, %s2306_s21  ;;  %s2911_s2 = scalar_lea.vmem %s3241_s7, %s2306_s21  ;;  %v637_v0 = vld [vmem:[%s591_s27] sm:$0xff] (!%p2316_p0) }
  0x33   : > { %s2893_s26 = scalar_lea.vmem %s3289_s3, %s2367_s22  ;;  %s2902_s30 = scalar_lea.vmem %s3290_s5, %s2367_s22 }
  0x34   : > { %s2916_s3 = scalar_lea.vmem %s3242_s8, %s2367_s22  ;;  %s2932_s21 = scalar_lea.vmem [#allocation2], %s2304_s17 }
  0x35   : > { %636 = sbr.rel (%p2316_p0) target bundleno = 60 (0x3c), region = 76  ;;  %639 = vst.msk [vmem:[%s2932_s21] sm:$0xff] (!%p2316_p0), %vm638_vm0, %v637_v0 }
  0x3c PF: > { %v2937_v1 = vld [vmem:[%s2932_s21] sm:$0xff]  ;;  %vm644_vm1 = vcmask 261120   ;;  %v2712_v9 = vmov 0.0   ;;  %vm2713_vm2 = vmmov 0   ;;  %s3291_s27 = scalar_lea.vmem %s3238_s4, %s2873_s19  ;;  %s2714_s14 = smov 104   ;;  %v752_v34 = vlaneseq }
  0x3d   : > { %v645_v2 = vsel %vm644_vm1, %v2937_v1, 0.0  ;;  %v2580_v8 = vld [vmem:[%s2893_s26] sm:$0xff]   ;;  %2405 = vmatprep.subr.bf16.mxu0 %v2712_v9  ;;  %2409 = vmatprep.mubr.msk.bf16.mxu0 %vm2713_vm2, %v2712_v9  ;;  %v2581_v10 = vld [vmem:[%s2893_s26 + $0x8] sm:$0xff]   ;;  %s2716_s17 = smov 112   ;;  %s2717_s22 = smov 96   ;;  %vm1198_vm3 = vcmask 64512  }
  0x3e   : > { %646 = vadd.xlane.f32.xlu0 %v645_v2  ;;  %2406 = vmatpush3.bf16.msra.mxu0 %v2580_v8  ;;  %v2317_v15 = vld [vmem:[%s2887_s13] ss:$0 sm:$0xff]  ;;  %v2318_v17 = vld [vmem:[%s2887_s13 + $0x1] ss:$0 sm:$0xff]  ;;  %s2715_s13 = smov 120   ;;  %s2718_s25 = smov 64  }
  0x3f   : > { %2425 = vmatprep.subr.bf16.mxu1 %v2712_v9  ;;  %2407 = vmatprep.subr.bf16.mxu0 %v2712_v9  ;;  %v2319_v21 = vld [vmem:[%s3291_s27] ss:$0 sm:$0xff]  ;;  %v2719_v32 = vmov 1983009808   ;;  %v2720_v36 = vmov 1934713408   ;;  %s3295_s27 = scalar_lea.vmem %s3240_s6, %s2873_s19 }
  0x40   : > { %2427 = vmatprep.mubr.msk.bf16.mxu1 %vm2713_vm2, %v2712_v9  ;;  %v750_v33 = vunpack.c.l.s4 %v2719_v32  ;;  %v782_v37 = vunpack.c.l.s4 %v2720_v36  ;;  %v753_v39 = vshrl.u32 %v752_v34, 7  ;;  %s3292_s15 = sld [smem:[#allocation17_spill]]  ;;  %s3293_s12 = sld [smem:[#allocation18_spill]]  ;;  %vm1448_vm4 = vcmask 1043456  }
  0x41   : > { %s2722_s18 = smov 8   ;;  %s2723_s16 = smov 24   ;;  %vm1783_vm5 = vcmask 130048   ;;  %vm1785_vm6 = vcmask 195584  }
  0x42   : > { %2408 = vmatpush3.bf16.msra.mxu0 %v2581_v10  ;;  %v751_v38 = vunpack.c.0.s8 %v750_v33  ;;  %v783_v41 = vunpack.c.0.s8 %v782_v37  ;;  %p2359_p1 = scmp.ge.s32.totalorder %s2694_s28, 1 }
  0x43   : > { %2413 = vmatprep.subr.bf16.mxu0 %v2712_v9 }
  0x44   : > { %v2976_v42 = vsub.s32 %v751_v38, %v753_v39  ;;  %v2978_v48 = vsub.s32 %v783_v41, %v753_v39 }
  0x46   : > { %s3294_s29 = scalar_lea.vmem %s3293_s12, %s3292_s15 }
  0xcb   : > { %v647_v3 = vpop.xlane.xlu0 %646 }
  0xcc   : > { %v649_v4 = vmul.f32 0.03125, %v647_v3 }
  0xce   : > { %v650_v5 = vsub.f32 %v2937_v1, %v649_v4 }
  0xd0   : > { %v651_v6 = vmul.f32 %v650_v5, %v650_v5 }
  0xd2   : > { %v652_v7 = vsel %vm644_vm1, %v651_v6, 0.0 }
  0xd3   : > { %653 = vadd.xlane.f32.xlu0 %v652_v7 }
 0x160   : > { %v654_v11 = vpop.xlane.xlu0 %653 }
 0x161   : > { %v655_v12 = vmul.f32 0.03125, %v654_v11 }
 0x163   : > { %v656_v13 = vadd.f32 1e-05, %v655_v12 }
 0x165   : > { %2594 = vrsqrt.f32 %v656_v13 }
 0x16f   : > { %v2595_v14 = vpop.eup %2594 }
 0x170   : > { %v658_v16 = vmul.f32 %v2595_v14, %v650_v5 }
 0x172   : > { %v663_v18 = vmul.f32 %v2317_v15, %v658_v16 }
 0x174   : > { %v668_v19 = vadd.f32 %v2318_v17, %v663_v18 }
 0x176   : > { %v669_v20 = vpack.c.bf16 %v668_v19, %v668_v19 }
 0x178   : > { %2410 = vmatmul.mubr.msk.bf16.vlgmr.msra.gmra.mrb[0].mxu0 %vm644_vm1, %v669_v20 }
 0x179   : > { %2415 = vmatprep.mubr.msk.bf16.mxu0 %vm2713_vm2, %v2712_v9 }
 0x24b   : > { %v730_v22 = vpop.f32.mrb[0].mxu0 }
 0x24c   : > { %v731_v23 = vadd.f32 %v2319_v21, %v730_v22  ;;  %v2411_v24 = vpop.f32.mrb[1].mxu0 }
 0x24d   : > { %v733_v25 = vpop.f32.mrb[2].mxu0 }
 0x24e   : > { %892 = vrot.lane.b32.xlu0 %v731_v23, %s2714_s14  ;;  %888 = vrot.lane.b32.xlu1 %v731_v23, %s2715_s13  ;;  %v2412_v26 = vpop.f32.mrb[3].mxu0  ;;  %v2963_v27 = vmul.f32 0.35355338, %v731_v23 }
 0x252   : > { %890 = vrot.lane.b32.xlu1 %v731_v23, %s2716_s17  ;;  %744 = vrot.lane.b32.xlu0 %v2963_v27, %s2714_s14 }
 0x256   : > { %894 = vrot.lane.b32.xlu1 %v731_v23, %s2717_s22  ;;  %1046 = vrot.lane.b32.xlu0 %v731_v23, %s2718_s25 }
 0x2c0   : > { %v889_v28 = vpop.permute.xlu1 %888  ;;  %v2970_v30 = vpop.permute.xlu0 %892 }
 0x2c1   : > { %896 = vrot.lane.b32.xlu1 %v889_v28, %s2717_s22 }
 0x2c4   : > { %v2967_v29 = vpop.permute.xlu1 %890  ;;  %v745_v58 = vpop.permute.xlu0 %744 }
 0x2c5   : > { %898 = vrot.lane.b32.xlu1 %v2967_v29, %s2717_s22 }
 0x2c8   : > { %v895_v31 = vpop.permute.xlu1 %894 }
 0x2c9   : > { %900 = vrot.lane.b32.xlu1 %v2970_v30, %s2717_s22 }
 0x2cd   : > { %738 = vrot.lane.b32.xlu1 %v2963_v27, %s2715_s13 }
 0x2d1   : > { %741 = vrot.lane.b32.xlu1 %v2963_v27, %s2716_s17 }
 0x2d5   : > { %1048 = vrot.lane.b32.xlu1 %v889_v28, %s2718_s25 }
 0x333   : > { %v897_v35 = vpop.permute.xlu1 %896 }
 0x337   : > { %v899_v40 = vpop.permute.xlu1 %898 }
 0x338   : > { %v906_v43 = vcombine.low %v895_v31, %v899_v40  ;;  %v907_v44 = vcombine.high %v895_v31, %v899_v40 }
 0x33a   : > { %v914_v49 = vrot.slane %v906_v43, %v2976_v42  ;;  %v921_v50 = vrot.slane %v907_v44, %v2976_v42 }
 0x33b   : > { %v901_v45 = vpop.permute.xlu1 %900 }
 0x33c   : > { %v922_v46 = vcombine.low %v897_v35, %v901_v45  ;;  %v923_v47 = vcombine.high %v897_v35, %v901_v45 }
 0x33e   : > { %v930_v51 = vrot.slane %v922_v46, %v2976_v42  ;;  %v937_v52 = vrot.slane %v923_v47, %v2976_v42 }
 0x33f   : > { %v739_v53 = vpop.permute.xlu1 %738 }
 0x340   : > { %v938_v54 = vcombine.low %v914_v49, %v930_v51  ;;  %v939_v55 = vcombine.high %v914_v49, %v930_v51  ;;  %v954_v56 = vcombine.low %v921_v50, %v937_v52  ;;  %v955_v57 = vcombine.high %v921_v50, %v937_v52 }
 0x341   : > { %v763_v63 = vcombine.low %v739_v53, %v745_v58  ;;  %v764_v0 = vcombine.high %v739_v53, %v745_v58 }
 0x342   : > { %v946_v59 = vrot.slane %v938_v54, %v2978_v48  ;;  %v953_v60 = vrot.slane %v939_v55, %v2978_v48  ;;  %v962_v61 = vrot.slane %v954_v56, %v2978_v48  ;;  %v969_v62 = vrot.slane %v955_v57, %v2978_v48 }
 0x343   : > { %v742_v2 = vpop.permute.xlu1 %741  ;;  %v771_v14 = vrot.slane %v763_v63, %v2976_v42  ;;  %v778_v15 = vrot.slane %v764_v0, %v2976_v42 }
 0x344   : > { %v974_v3 = vcombine.low %v946_v59, %v953_v60  ;;  %v2325_v4 = vcombine.high %v946_v59, %v953_v60  ;;  %v990_v5 = vcombine.low %v962_v61, %v969_v62  ;;  %v2326_v6 = vcombine.high %v962_v61, %v969_v62 }
 0x345   : > { %v747_v7 = vcombine.low %v2963_v27, %v742_v2  ;;  %v748_v8 = vcombine.high %v2963_v27, %v742_v2 }
 0x346   : > { %v981_v10 = vrot.slane %v974_v3, %v2976_v42  ;;  %v989_v11 = vrot.slane %v2325_v4, %v2976_v42  ;;  %v997_v12 = vrot.slane %v990_v5, %v2976_v42  ;;  %v1005_v13 = vrot.slane %v2326_v6, %v2976_v42 }
 0x347   : > { %v755_v16 = vrot.slane %v747_v7, %v2976_v42  ;;  %v762_v17 = vrot.slane %v748_v8, %v2976_v42 }
 0x348   : > { %v1006_v18 = vcombine.low %v981_v10, %v989_v11  ;;  %v1022_v19 = vcombine.low %v997_v12, %v1005_v13  ;;  %v1007_v20 = vcombine.high %v981_v10, %v989_v11  ;;  %v1023_v21 = vcombine.high %v997_v12, %v1005_v13  ;;  %v2333_v12 = vld [vmem:[%s3294_s29] ss:$0 sm:$0xff] }
 0x349   : > { %v779_v22 = vcombine.low %v755_v16, %v771_v14  ;;  %v780_v23 = vcombine.high %v755_v16, %v771_v14  ;;  %v795_v24 = vcombine.low %v762_v17, %v778_v15  ;;  %v796_v25 = vcombine.high %v762_v17, %v778_v15 }
 0x34a   : > { %v1014_v26 = vrot.slane %v1006_v18, %v2978_v48  ;;  %v1030_v27 = vrot.slane %v1022_v19, %v2978_v48  ;;  %v1021_v28 = vrot.slane %v1007_v20, %v2978_v48  ;;  %v1037_v31 = vrot.slane %v1023_v21, %v2978_v48 }
 0x34b   : > { %v787_v32 = vrot.slane %v779_v22, %v2978_v48  ;;  %v794_v33 = vrot.slane %v780_v23, %v2978_v48  ;;  %v803_v34 = vrot.slane %v795_v24, %v2978_v48  ;;  %v810_v35 = vrot.slane %v796_v25, %v2978_v48 }
 0x34c   : > { %v1038_v36 = vcombine.low %v1014_v26, %v1030_v27  ;;  %v1040_v37 = vcombine.low %v1021_v28, %v1037_v31  ;;  %v1039_v52 = vcombine.high %v1014_v26, %v1030_v27  ;;  %v1041_v4 = vcombine.high %v1021_v28, %v1037_v31 }
 0x34d   : > { %v815_v38 = vcombine.low %v787_v32, %v794_v33  ;;  %v2323_v39 = vcombine.high %v787_v32, %v794_v33  ;;  %v831_v40 = vcombine.low %v803_v34, %v810_v35  ;;  %v2324_v41 = vcombine.high %v803_v34, %v810_v35 }
 0x34e   : > { %v1042_v43 = vpack.c.bf16 %v1038_v36, %v1038_v36  ;;  %v1044_v44 = vpack.c.bf16 %v1040_v37, %v1040_v37  ;;  %v1043_v62 = vpack.c.bf16 %v1039_v52, %v1039_v52  ;;  %v1045_v6 = vpack.c.bf16 %v1041_v4, %v1041_v4 }
 0x34f   : > { %v822_v45 = vrot.slane %v815_v38, %v2976_v42  ;;  %v830_v46 = vrot.slane %v2323_v39, %v2976_v42  ;;  %v838_v47 = vrot.slane %v831_v40, %v2976_v42  ;;  %v846_v49 = vrot.slane %v2324_v41, %v2976_v42  ;;  %v1049_v39 = vpop.permute.xlu1 %1048 }
 0x350   : > { %v1203_v50 = vsel %vm1198_vm3, %v1042_v43, 0  ;;  %v1295_v51 = vsel %vm1198_vm3, %v1044_v44, 0  ;;  %v1249_v3 = vsel %vm1198_vm3, %v1043_v62, 0  ;;  %v1341_v8 = vsel %vm1198_vm3, %v1045_v6, 0 }
 0x351   : > { %v847_v53 = vcombine.low %v822_v45, %v830_v46  ;;  %v863_v54 = vcombine.low %v838_v47, %v846_v49  ;;  %2414 = vmatpush3.bf16.xpose.msra.mxu0 %v1203_v50  ;;  %2426 = vmatpush3.bf16.xpose.msra.mxu1 %v1295_v51  ;;  %v848_v55 = vcombine.high %v822_v45, %v830_v46 }
 0x352   : > { %2419 = vmatprep.subr.bf16.mxu0 %v2712_v9  ;;  %v864_v56 = vcombine.high %v838_v47, %v846_v49  ;;  %2437 = vmatprep.subr.bf16.mxu1 %v2712_v9 }
 0x353   : > { %v855_v57 = vrot.slane %v847_v53, %v2978_v48  ;;  %v871_v58 = vrot.slane %v863_v54, %v2978_v48  ;;  %v862_v59 = vrot.slane %v848_v55, %v2978_v48 }
 0x354   : > { %v878_v60 = vrot.slane %v864_v56, %v2978_v48 }
 0x355   : > { %v879_v61 = vcombine.low %v855_v57, %v871_v58  ;;  %v880_v5 = vcombine.high %v855_v57, %v871_v58 }
 0x356   : > { %v881_v63 = vcombine.low %v862_v59, %v878_v60  ;;  %v882_v10 = vcombine.high %v862_v59, %v878_v60 }
 0x357   : > { %v883_v0 = vpack.c.bf16 %v879_v61, %v879_v61  ;;  %v884_v7 = vpack.c.bf16 %v880_v5, %v880_v5 }
 0x358   : > { %v885_v2 = vpack.c.bf16 %v881_v63, %v881_v63  ;;  %v886_v11 = vpack.c.bf16 %v882_v10, %v882_v10 }
 0x359   : > { %2416 = vmatmul.mubr.msk.bf16.vlgmr.msra.gmra.mrb[4].mxu0 %vm1198_vm3, %v883_v0 }
 0x35a   : > { %2428 = vmatmul.mubr.msk.bf16.vlgmr.msra.gmra.mrb[0].mxu1 %vm1198_vm3, %v885_v2  ;;  %2420 = vmatpush3.bf16.xpose.msra.mxu0 %v1249_v3 }
 0x35b   : > { %2421 = vmatprep.mubr.msk.bf16.mxu0 %vm2713_vm2, %v2712_v9  ;;  %2431 = vmatprep.subr.bf16.mxu0 %v2712_v9 }
 0x35c   : > { %2439 = vmatprep.mubr.msk.bf16.mxu1 %vm2713_vm2, %v2712_v9 }
 0x361   : > { %2422 = vmatmul.mubr.msk.bf16.vlgmr.msra.gmra.mrb[8].mxu0 %vm1198_vm3, %v884_v7 }
 0x362   : > { %2432 = vmatpush3.bf16.xpose.msra.mxu0 %v1341_v8  ;;  %2433 = vmatprep.mubr.msk.bf16.mxu0 %vm2713_vm2, %v2712_v9 }
 0x363   : > { %2443 = vmatprep.subr.bf16.mxu0 %v2712_v9 }
 0x369   : > { %2434 = vmatmul.mubr.msk.bf16.vlgmr.msra.gmra.mrb[12].mxu0 %vm1198_vm3, %v886_v11 }
 0x36a   : > { %2445 = vmatprep.mubr.msk.bf16.mxu0 %vm2713_vm2, %v2712_v9 }
 0x42c   : > { %v1239_v13 = vpop.f32.mrb[4].mxu0 }
 0x42d   : > { %v1389_v14 = vadd.f32 %v2333_v12, %v1239_v13  ;;  %v1331_v15 = vpop.f32.mrb[0].mxu1  ;;  %v2417_v16 = vpop.f32.mrb[5].mxu0 }
 0x42e   : > { %v2429_v17 = vpop.f32.mrb[1].mxu1  ;;  %v1242_v18 = vpop.f32.mrb[6].mxu0  ;;  %v3045_v35 = vadd.f32 %v2333_v12, %v1331_v15 }
 0x42f   : > { %v1334_v19 = vpop.f32.mrb[2].mxu1  ;;  %v2418_v20 = vpop.f32.mrb[7].mxu0  ;;  %v1393_v21 = vsel %vm1198_vm3, %v1389_v14, -inf }
 0x430   : > { %v2430_v22 = vpop.f32.mrb[3].mxu1  ;;  %1394 = vmax.xlane.f32.xlu1 %v1393_v21  ;;  %v1399_v36 = vsel %vm1198_vm3, %v3045_v35, -inf }
 0x434   : > { %v1285_v23 = vpop.f32.mrb[8].mxu0 }
 0x435   : > { %v1390_v24 = vadd.f32 %v2333_v12, %v1285_v23  ;;  %v2423_v25 = vpop.f32.mrb[9].mxu0 }
 0x436   : > { %v1288_v26 = vpop.f32.mrb[10].mxu0 }
 0x437   : > { %v2424_v27 = vpop.f32.mrb[11].mxu0  ;;  %v1396_v28 = vsel %vm1198_vm3, %v1390_v24, -inf }
 0x438   : > { %1397 = vmax.xlane.f32.xlu0 %v1396_v28 }
 0x43c   : > { %v1377_v31 = vpop.f32.mrb[12].mxu0 }
 0x43d   : > { %v2435_v32 = vpop.f32.mrb[13].mxu0  ;;  %v3049_v37 = vadd.f32 %v2333_v12, %v1377_v31 }
 0x43e   : > { %v1380_v33 = vpop.f32.mrb[14].mxu0 }
 0x43f   : > { %v2436_v34 = vpop.f32.mrb[15].mxu0  ;;  %v1402_v38 = vsel %vm1198_vm3, %v3049_v37, -inf }
 0x441   : > { %1050 = vrot.lane.b32.xlu1 %v2967_v29, %s2718_s25  ;;  %v1047_v29 = vpop.permute.xlu0 %1046 }
 0x44e   : > { %1052 = vrot.lane.b32.xlu0 %v2970_v30, %s2718_s25 }
 0x465   : > { %1400 = vmax.xlane.f32.xlu1 %v1399_v36 }
 0x46d   : > { %1403 = vmax.xlane.f32.xlu0 %v1402_v38 }
 0x4bd   : > { %v1395_v40 = vpop.xlane.xlu1 %1394 }
 0x4be   : > { %v1405_v41 = vsub.f32 %v1389_v14, %v1395_v40 }
 0x4c0   : > { %v1409_v43 = vpack.c.bf16 %v1405_v41, %v1405_v41 }
 0x4c1   : > { %v1051_v30 = vpop.permute.xlu1 %1050 }
 0x4c2   : > { %v1414_v44 = vmul.bf16 1069105081, %v1409_v43  ;;  %v1058_v47 = vcombine.low %v1047_v29, %v1051_v30  ;;  %v1059_v49 = vcombine.high %v1047_v29, %v1051_v30 }
 0x4c4   : > { %2596 = vpow.bf16 %v1414_v44  ;;  %v1066_v55 = vrot.slane %v1058_v47, %v2976_v42  ;;  %v1073_v56 = vrot.slane %v1059_v49, %v2976_v42 }
 0x4c5   : > { %v1398_v45 = vpop.xlane.xlu0 %1397 }
 0x4c6   : > { %v1406_v46 = vsub.f32 %v1390_v24, %v1398_v45 }
 0x4c8   : > { %v1410_v50 = vpack.c.bf16 %v1406_v46, %v1406_v46 }
 0x4c9   : > { %v1053_v51 = vpop.permute.xlu0 %1052 }
 0x4ca   : > { %v1417_v52 = vmul.bf16 1069105081, %v1410_v50  ;;  %v1074_v53 = vcombine.low %v1049_v39, %v1053_v51  ;;  %v1075_v54 = vcombine.high %v1049_v39, %v1053_v51 }
 0x4cc   : > { %2598 = vpow.bf16 %v1417_v52  ;;  %v1082_v57 = vrot.slane %v1074_v53, %v2976_v42  ;;  %v1089_v58 = vrot.slane %v1075_v54, %v2976_v42 }
 0x4ce   : > { %v1090_v59 = vcombine.low %v1066_v55, %v1082_v57  ;;  %v1091_v60 = vcombine.high %v1066_v55, %v1082_v57  ;;  %v1106_v61 = vcombine.low %v1073_v56, %v1089_v58  ;;  %v1107_v62 = vcombine.high %v1073_v56, %v1089_v58 }
 0x4cf   : > { %v2597_v63 = vpop.eup %2596 }
 0x4d0   : > { %v1098_v0 = vrot.slane %v1090_v59, %v2978_v48  ;;  %v1105_v2 = vrot.slane %v1091_v60, %v2978_v48  ;;  %v1114_v3 = vrot.slane %v1106_v61, %v2978_v48  ;;  %v1121_v4 = vrot.slane %v1107_v62, %v2978_v48 }
 0x4d1   : > { %v1425_v5 = vunpack.c.l.bf16 %v2597_v63 }
 0x4d2   : > { %v1126_v6 = vcombine.low %v1098_v0, %v1105_v2  ;;  %v2327_v7 = vcombine.high %v1098_v0, %v1105_v2  ;;  %v1142_v8 = vcombine.low %v1114_v3, %v1121_v4  ;;  %v2328_v10 = vcombine.high %v1114_v3, %v1121_v4 }
 0x4d3   : > { %v1429_v11 = vsel %vm1198_vm3, %v1425_v5, 0.0 }
 0x4d4   : > { %v1133_v12 = vrot.slane %v1126_v6, %v2976_v42  ;;  %v1141_v13 = vrot.slane %v2327_v7, %v2976_v42  ;;  %v1149_v14 = vrot.slane %v1142_v8, %v2976_v42  ;;  %v1157_v15 = vrot.slane %v2328_v10, %v2976_v42  ;;  %1430 = vadd.xlane.f32.xlu0 %v1429_v11 }
 0x4d6   : > { %v1158_v16 = vcombine.low %v1133_v12, %v1141_v13  ;;  %v1174_v17 = vcombine.low %v1149_v14, %v1157_v15  ;;  %v1159_v18 = vcombine.high %v1133_v12, %v1141_v13  ;;  %v1175_v19 = vcombine.high %v1149_v14, %v1157_v15 }
 0x4d7   : > { %v2599_v20 = vpop.eup %2598 }
 0x4d8   : > { %v1426_v21 = vunpack.c.l.bf16 %v2599_v20  ;;  %v1166_v22 = vrot.slane %v1158_v16, %v2978_v48  ;;  %v1182_v23 = vrot.slane %v1174_v17, %v2978_v48  ;;  %v1173_v24 = vrot.slane %v1159_v18, %v2978_v48 }
 0x4d9   : > { %v1189_v25 = vrot.slane %v1175_v19, %v2978_v48 }
 0x4da   : > { %v1432_v26 = vsel %vm1198_vm3, %v1426_v21, 0.0  ;;  %v1190_v27 = vcombine.low %v1166_v22, %v1182_v23  ;;  %v1191_v28 = vcombine.high %v1166_v22, %v1182_v23 }
 0x4db   : > { %1433 = vadd.xlane.f32.xlu1 %v1432_v26  ;;  %v1192_v31 = vcombine.low %v1173_v24, %v1189_v25  ;;  %v1193_v32 = vcombine.high %v1173_v24, %v1189_v25 }
 0x4dc   : > { %v1194_v33 = vpack.c.bf16 %v1190_v27, %v1190_v27  ;;  %v1195_v34 = vpack.c.bf16 %v1191_v28, %v1191_v28 }
 0x4dd   : > { %v1196_v39 = vpack.c.bf16 %v1192_v31, %v1192_v31  ;;  %v1197_v40 = vpack.c.bf16 %v1193_v32, %v1193_v32 }
 0x4de   : > { %v1450_v36 = vsel %vm1448_vm4, %v1194_v33, 0  ;;  %v1496_v38 = vsel %vm1448_vm4, %v1195_v34, 0 }
 0x4df   : > { %2438 = vmatpush3.bf16.msra.mxu1 %v1450_v36  ;;  %2444 = vmatpush3.bf16.msra.mxu0 %v1496_v38  ;;  %v1542_v41 = vsel %vm1448_vm4, %v1196_v39, 0  ;;  %v1588_v43 = vsel %vm1448_vm4, %v1197_v40, 0  ;;  %v2582_v36 = vld [vmem:[%s2902_s30] sm:$0xff]  }
 0x4e0   : > { %2449 = vmatprep.subr.bf16.mxu1 %v2712_v9  ;;  %2455 = vmatprep.subr.bf16.mxu0 %v2712_v9 }
 0x4e2   : > { %2440 = vmatmul.mubr.msk.bf16.vlgmr.msra.gmra.mrb[4].mxu1 %vm1198_vm3, %v2597_v63  ;;  %2446 = vmatmul.mubr.msk.bf16.vlgmr.msra.gmra.mrb[16].mxu0 %vm1198_vm3, %v2599_v20 }
 0x4e3   : > { %2450 = vmatpush3.bf16.msra.mxu1 %v1542_v41  ;;  %2456 = vmatpush3.bf16.msra.mxu0 %v1588_v43 }
 0x4e4   : > { %2451 = vmatprep.mubr.msk.bf16.mxu1 %vm2713_vm2, %v2712_v9  ;;  %2457 = vmatprep.mubr.msk.bf16.mxu0 %vm2713_vm2, %v2712_v9 }
 0x4e5   : > { %2461 = vmatprep.subr.bf16.mxu1 %v2712_v9  ;;  %2469 = vmatprep.subr.bf16.mxu0 %v2712_v9 }
 0x4f2   : > { %v1401_v29 = vpop.xlane.xlu1 %1400 }
 0x4f3   : > { %v1407_v44 = vsub.f32 %v3045_v35, %v1401_v29 }
 0x4f5   : > { %v1411_v30 = vpack.c.bf16 %v1407_v44, %v1407_v44 }
 0x4f7   : > { %v1420_v45 = vmul.bf16 1069105081, %v1411_v30 }
 0x4f9   : > { %2600 = vpow.bf16 %v1420_v45  ;;  %v2583_v45 = vld [vmem:[%s2902_s30 + $0x8] sm:$0xff]   ;;  %s2721_s30 = smov 16  }
 0x4fa   : > { %v1404_v46 = vpop.xlane.xlu0 %1403 }
 0x4fb   : > { %v1408_v47 = vsub.f32 %v3049_v37, %v1404_v46 }
 0x4fd   : > { %v1412_v49 = vpack.c.bf16 %v1408_v47, %v1408_v47 }
 0x4ff   : > { %v1423_v50 = vmul.bf16 1069105081, %v1412_v49 }
 0x501   : > { %2602 = vpow.bf16 %v1423_v50 }
 0x504   : > { %v2601_v51 = vpop.eup %2600 }
 0x505   : > { %2452 = vmatmul.mubr.msk.bf16.vlgmr.msra.gmra.mrb[8].mxu1 %vm1198_vm3, %v2601_v51  ;;  %v1427_v52 = vunpack.c.l.bf16 %v2601_v51 }
 0x506   : > { %2465 = vmatprep.mubr.msk.bf16.mxu1 %vm2713_vm2, %v2712_v9  ;;  %2462 = vmatpush3.bf16.msra.mxu1 %v2582_v36 }
 0x507   : > { %v1435_v53 = vsel %vm1198_vm3, %v1427_v52, 0.0  ;;  %2463 = vmatprep.subr.bf16.mxu1 %v2712_v9 }
 0x508   : > { %1436 = vadd.xlane.f32.xlu0 %v1435_v53 }
 0x50a   : > { %2464 = vmatpush3.bf16.msra.mxu1 %v2583_v45 }
 0x50b   : > { %2477 = vmatprep.subr.bf16.mxu1 %v2712_v9 }
 0x50c   : > { %v2603_v35 = vpop.eup %2602 }
 0x50d   : > { %2458 = vmatmul.mubr.msk.bf16.vlgmr.msra.gmra.mrb[20].mxu0 %vm1198_vm3, %v2603_v35  ;;  %v1428_v54 = vunpack.c.l.bf16 %v2603_v35 }
 0x50e   : > { %2473 = vmatprep.mubr.msk.bf16.mxu0 %vm2713_vm2, %v2712_v9 }
 0x50f   : > { %v1438_v37 = vsel %vm1198_vm3, %v1428_v54, 0.0 }
 0x510   : > { %1439 = vadd.xlane.f32.xlu1 %v1438_v37 }
 0x561   : > { %v1431_v63 = vpop.xlane.xlu0 %1430 }
 0x562   : > { %2604 = vrcp.f32 %v1431_v63 }
 0x568   : > { %v1434_v2 = vpop.xlane.xlu1 %1433 }
 0x56c   : > { %v2605_v4 = vpop.eup %2604 }
 0x595   : > { %v1437_v0 = vpop.xlane.xlu0 %1436 }
 0x596   : > { %2606 = vrcp.f32 %v1437_v0 }
 0x597   : > { %2608 = vrcp.f32 %v1434_v2 }
 0x59d   : > { %v1440_v3 = vpop.xlane.xlu1 %1439 }
 0x59e   : > { %2610 = vrcp.f32 %v1440_v3  ;;  %v2340_v3 = vld [vmem:[%s3295_s27] ss:$0 sm:$0xff] }
 0x5a0   : > { %v2607_v5 = vpop.eup %2606 }
 0x5a1   : > { %v2609_v15 = vpop.eup %2608 }
 0x5a8   : > { %v2611_v16 = vpop.eup %2610 }
 0x5b5   : > { %v1486_v55 = vpop.f32.mrb[4].mxu1  ;;  %v1532_v56 = vpop.f32.mrb[16].mxu0 }
 0x5b6   : > { %v2441_v57 = vpop.f32.mrb[5].mxu1  ;;  %v2447_v58 = vpop.f32.mrb[17].mxu0  ;;  %v1630_v7 = vmul.f32 %v2605_v4, %v1486_v55  ;;  %v1631_v18 = vmul.f32 %v2609_v15, %v1532_v56 }
 0x5b7   : > { %v1489_v59 = vpop.f32.mrb[6].mxu1  ;;  %v1535_v60 = vpop.f32.mrb[18].mxu0 }
 0x5b8   : > { %v2442_v61 = vpop.f32.mrb[7].mxu1  ;;  %v2448_v62 = vpop.f32.mrb[19].mxu0 }
 0x5d8   : > { %v1578_v6 = vpop.f32.mrb[8].mxu1 }
 0x5d9   : > { %v1632_v8 = vmul.f32 %v2607_v5, %v1578_v6  ;;  %v2453_v10 = vpop.f32.mrb[9].mxu1 }
 0x5da   : > { %v1581_v11 = vpop.f32.mrb[10].mxu1 }
 0x5db   : > { %v1634_v12 = vcombine.low %v1630_v7, %v1632_v8  ;;  %v1635_v13 = vcombine.high %v1630_v7, %v1632_v8  ;;  %v2454_v14 = vpop.f32.mrb[11].mxu1 }
 0x5dd   : > { %v1642_v25 = vrot.slane %v1634_v12, %v2976_v42  ;;  %v1649_v26 = vrot.slane %v1635_v13, %v2976_v42 }
 0x5e0   : > { %v1624_v17 = vpop.f32.mrb[20].mxu0 }
 0x5e1   : > { %v1633_v19 = vmul.f32 %v2611_v16, %v1624_v17  ;;  %v2459_v20 = vpop.f32.mrb[21].mxu0  ;;  %v2584_v17 = vld [vmem:[%s2916_s3] sm:$0xff]  }
 0x5e2   : > { %v1627_v21 = vpop.f32.mrb[22].mxu0  ;;  %2470 = vmatpush3.bf16.msra.mxu0 %v2584_v17  ;;  %v2587_v20 = vld [vmem:[%s2926_s24 + $0x8] sm:$0xff]  }
 0x5e3   : > { %v1650_v22 = vcombine.low %v1631_v18, %v1633_v19  ;;  %v1651_v23 = vcombine.high %v1631_v18, %v1633_v19  ;;  %v2460_v24 = vpop.f32.mrb[23].mxu0  ;;  %v2585_v18 = vld [vmem:[%s2916_s3 + $0x8] sm:$0xff]   ;;  %2471 = vmatprep.subr.bf16.mxu0 %v2712_v9  ;;  %v2586_v19 = vld [vmem:[%s2926_s24] sm:$0xff]   ;;  %v2588_v21 = vld [vmem:[%s2926_s24 + $0x10] sm:$0xff]  }
 0x5e4   : > { %v2591_v24 = vld [vmem:[%s2926_s24 + $0x28] sm:$0xff]  }
 0x5e5   : > { %v1658_v27 = vrot.slane %v1650_v22, %v2976_v42  ;;  %v1665_v28 = vrot.slane %v1651_v23, %v2976_v42  ;;  %v2589_v22 = vld [vmem:[%s2926_s24 + $0x18] sm:$0xff]   ;;  %v2590_v23 = vld [vmem:[%s2926_s24 + $0x20] sm:$0xff]  }
 0x5e6   : > { %2472 = vmatpush3.bf16.msra.mxu0 %v2585_v18 }
 0x5e7   : > { %v1666_v31 = vcombine.low %v1642_v25, %v1658_v27  ;;  %v1667_v32 = vcombine.high %v1642_v25, %v1658_v27  ;;  %v1682_v33 = vcombine.low %v1649_v26, %v1665_v28  ;;  %v1683_v34 = vcombine.high %v1649_v26, %v1665_v28 }
 0x5e9   : > { %v1674_v38 = vrot.slane %v1666_v31, %v2978_v48  ;;  %v1681_v39 = vrot.slane %v1667_v32, %v2978_v48  ;;  %v1690_v40 = vrot.slane %v1682_v33, %v2978_v48  ;;  %v1697_v41 = vrot.slane %v1683_v34, %v2978_v48  ;;  %v2344_v31 = vld [vmem:[%s2911_s2] ss:$0 sm:$0xff]  ;;  %v2345_v33 = vld [vmem:[%s2911_s2 + $0x1] ss:$0 sm:$0xff] }
 0x5eb   : > { %v1702_v43 = vcombine.low %v1674_v38, %v1681_v39  ;;  %v2338_v29 = vcombine.high %v1674_v38, %v1681_v39  ;;  %v1718_v44 = vcombine.low %v1690_v40, %v1697_v41  ;;  %v2339_v30 = vcombine.high %v1690_v40, %v1697_v41  ;;  %v2592_v39 = vld [vmem:[%s2926_s24 + $0x30] sm:$0xff]   ;;  %v2593_v40 = vld [vmem:[%s2926_s24 + $0x38] sm:$0xff]   ;;  %v2346_v41 = vld [vmem:[%s623_s0] ss:$0 sm:$0xff] }
 0x5ed   : > { %v1709_v46 = vrot.slane %v1702_v43, %v2976_v42  ;;  %v1717_v47 = vrot.slane %v2338_v29, %v2976_v42  ;;  %v1725_v49 = vrot.slane %v1718_v44, %v2976_v42  ;;  %v1733_v50 = vrot.slane %v2339_v30, %v2976_v42 }
 0x5ef   : > { %v1735_v51 = vcombine.high %v1709_v46, %v1717_v47  ;;  %v1751_v52 = vcombine.high %v1725_v49, %v1733_v50  ;;  %v1734_v53 = vcombine.low %v1709_v46, %v1717_v47  ;;  %v1750_v35 = vcombine.low %v1725_v49, %v1733_v50 }
 0x5f1   : > { %v1749_v54 = vrot.slane %v1735_v51, %v2978_v48  ;;  %v1765_v37 = vrot.slane %v1751_v52, %v2978_v48  ;;  %v1742_v55 = vrot.slane %v1734_v53, %v2978_v48  ;;  %v1758_v56 = vrot.slane %v1750_v35, %v2978_v48 }
 0x5f3   : > { %v1768_v57 = vcombine.low %v1749_v54, %v1765_v37  ;;  %v1767_v58 = vcombine.high %v1742_v55, %v1758_v56  ;;  %v1769_v59 = vcombine.high %v1749_v54, %v1765_v37  ;;  %v1766_v60 = vcombine.low %v1742_v55, %v1758_v56 }
 0x5f5   : > { %1775 = vrot.lane.b32.xlu1 %v1768_v57, %s2721_s30  ;;  %1771 = vrot.lane.b32.xlu0 %v1767_v58, %s2722_s18 }
 0x5f9   : > { %1779 = vrot.lane.b32.xlu1 %v1769_v59, %s2723_s16 }
 0x667   : > { %v1776_v42 = vpop.permute.xlu1 %1775  ;;  %v1772_v61 = vpop.permute.xlu0 %1771 }
 0x668   : > { %v1782_v62 = vsel %vm1198_vm3, %v1766_v60, %v1772_v61 }
 0x669   : > { %v1784_v63 = vsel %vm1783_vm5, %v1782_v62, %v1776_v42 }
 0x66b   : > { %v1780_v48 = vpop.permute.xlu1 %1779 }
 0x66c   : > { %v1786_v0 = vsel %vm1785_vm6, %v1784_v63, %v1780_v48 }
 0x66d   : > { %v1787_v2 = vpack.c.bf16 %v1786_v0, %v1786_v0 }
 0x66f   : > { %2466 = vmatmul.mubr.msk.bf16.vlgmr.msra.gmra.mrb[12].mxu1 %vm644_vm1, %v1787_v2 }
 0x670   : > { %2493 = vmatprep.mubr.msk.bf16.mxu1 %vm2713_vm2, %v2712_v9  ;;  %2478 = vmatpush3.bf16.msra.mxu1 %v2586_v19 }
 0x671   : > { %2479 = vmatprep.subr.bf16.mxu1 %v2712_v9 }
 0x674   : > { %2480 = vmatpush3.bf16.msra.mxu1 %v2587_v20 }
 0x675   : > { %2481 = vmatprep.subr.bf16.mxu1 %v2712_v9 }
 0x678   : > { %2482 = vmatpush3.bf16.msra.mxu1 %v2588_v21 }
 0x679   : > { %2483 = vmatprep.subr.bf16.mxu1 %v2712_v9 }
 0x67c   : > { %2484 = vmatpush3.bf16.msra.mxu1 %v2589_v22 }
 0x67d   : > { %2485 = vmatprep.subr.bf16.mxu1 %v2712_v9 }
 0x680   : > { %2486 = vmatpush3.bf16.msra.mxu1 %v2590_v23 }
 0x681   : > { %2487 = vmatprep.subr.bf16.mxu1 %v2712_v9 }
 0x684   : > { %2488 = vmatpush3.bf16.msra.mxu1 %v2591_v24 }
 0x685   : > { %2489 = vmatprep.subr.bf16.mxu1 %v2712_v9 }
 0x688   : > { %2490 = vmatpush3.bf16.msra.mxu1 %v2592_v39 }
 0x689   : > { %2491 = vmatprep.subr.bf16.mxu1 %v2712_v9  ;;  %v2350_v9 = vld [vmem:[%s631_s1] ss:$0 sm:$0xff] }
 0x68c   : > { %2492 = vmatpush3.bf16.msra.mxu1 %v2593_v40 }
 0x742   : > { %v1848_v4 = vpop.f32.mrb[12].mxu1 }
 0x743   : > { %v1849_v5 = vadd.f32 %v2340_v3, %v1848_v4  ;;  %v2467_v6 = vpop.f32.mrb[13].mxu1 }
 0x744   : > { %v1851_v7 = vpop.f32.mrb[14].mxu1 }
 0x745   : > { %v1854_v8 = vadd.f32 %v1849_v5, %v2937_v1  ;;  %v2468_v10 = vpop.f32.mrb[15].mxu1 }
 0x747   : > { %1855 = vst.msk [vmem:[%s2932_s21] sm:$0xff] %vm644_vm1, %v1854_v8 }
 0x74e   : > { %v3128_v11 = vld [vmem:[%s2932_s21] sm:$0xff] }
 0x74f   : > { %v1859_v12 = vsel %vm644_vm1, %v3128_v11, 0.0 }
 0x750   : > { %1860 = vadd.xlane.f32.xlu0 %v1859_v12 }
 0x7dd   : > { %v1861_v13 = vpop.xlane.xlu0 %1860 }
 0x7de   : > { %v1862_v14 = vmul.f32 0.03125, %v1861_v13 }
 0x7e0   : > { %v1863_v15 = vsub.f32 %v3128_v11, %v1862_v14 }
 0x7e2   : > { %v1864_v16 = vmul.f32 %v1863_v15, %v1863_v15 }
 0x7e4   : > { %v1865_v1 = vsel %vm644_vm1, %v1864_v16, 0.0 }
 0x7e5   : > { %1866 = vadd.xlane.f32.xlu1 %v1865_v1 }
 0x872   : > { %v1867_v25 = vpop.xlane.xlu1 %1866 }
 0x873   : > { %v1868_v26 = vmul.f32 0.03125, %v1867_v25 }
 0x875   : > { %v1869_v27 = vadd.f32 1e-05, %v1868_v26 }
 0x877   : > { %2612 = vrsqrt.f32 %v1869_v27 }
 0x881   : > { %v2613_v28 = vpop.eup %2612 }
 0x882   : > { %v1871_v32 = vmul.f32 %v2613_v28, %v1863_v15 }
 0x884   : > { %v1876_v34 = vmul.f32 %v2344_v31, %v1871_v32 }
 0x886   : > { %v1881_v36 = vadd.f32 %v2345_v33, %v1876_v34 }
 0x888   : > { %v1882_v38 = vpack.c.bf16 %v1881_v36, %v1881_v36 }
 0x88a   : > { %2474 = vmatmul.mubr.msk.bf16.vlgmr.msra.gmra.mrb[24].mxu0 %vm644_vm1, %v1882_v38 }
 0x95d   : > { %v1943_v43 = vpop.f32.mrb[24].mxu0 }
 0x95e   : > { %v1944_v29 = vadd.f32 %v2346_v41, %v1943_v43  ;;  %v2475_v44 = vpop.f32.mrb[25].mxu0 }
 0x95f   : > { %v1946_v30 = vpop.f32.mrb[26].mxu0 }
 0x960   : > { %v1949_v45 = vmax.f32 %v1944_v29, 0.0  ;;  %v2476_v46 = vpop.f32.mrb[27].mxu0 }
 0x962   : > { %v1950_v47 = vpack.c.bf16 %v1949_v45, %v1949_v45 }
 0x964   : > { %2494 = vmatmul.mubr.bf16.vlgmr.msra.gmra.mrb[16].mxu1 %v1950_v47 }
 0xa34   : > { %2066 = sbr.rel (%p2359_p1) target bundleno = 2621 (0xa3d), region = 80 }
 0xa37   : > { %v2056_v49 = vpop.f32.mrb[16].mxu1 }
 0xa38   : > { %v2057_v50 = vadd.f32 %v2350_v9, %v2056_v49  ;;  %v2495_v51 = vpop.f32.mrb[17].mxu1 }
 0xa39   : > { %v2059_v52 = vpop.f32.mrb[18].mxu1 }
 0xa3a   : > { %v2062_v53 = vadd.f32 %v2057_v50, %v3128_v11  ;;  %v2496_v35 = vpop.f32.mrb[19].mxu1 }
 0xa3c   : > { %2067 = vst.msk [vmem:[%s2932_s21] sm:$0xff] %vm644_vm1, %v2062_v53 }
 0xa3d PF: > { %p2360_p2 = scmp.ne.s32.totalorder %s2694_s28, 1 }
 0xa3e   : > { %v2074_v54 = vsel (!%p2360_p2), %vm644_vm1, %v2062_v53, 0.0  ;;  %s3296_s28 = sld [smem:[#allocation23_spill]] (!%p2360_p2) }
 0xa3f   : > { %2071 = sbr.rel (%p2360_p2) target bundleno = 2936 (0xb78), region = 84  ;;  %2075 = vadd.xlane.f32.xlu0 (!%p2360_p2), %v2074_v54 }
 0xa44   : > { %s3297_s24 = smov (!%p2360_p2), %s3296_s28  ;;  %v2361_v62 = vld [vmem:[%s3296_s28] ss:$0 sm:$0xff] (!%p2360_p2) }
 0xa45   : > { %v2362_v63 = vld [vmem:[%s3297_s24 + $0x1] ss:$0 sm:$0xff] (!%p2360_p2) }
 0xacc   : > { %v2076_v37 = vpop.xlane.xlu0 %2075 }
 0xacd   : > { %v2077_v55 = vmul.f32 0.03125, %v2076_v37 }
 0xacf   : > { %v2078_v56 = vsub.f32 %v2062_v53, %v2077_v55 }
 0xad1   : > { %v2079_v57 = vmul.f32 %v2078_v56, %v2078_v56 }
 0xad3   : > { %v2080_v58 = vsel %vm644_vm1, %v2079_v57, 0.0 }
 0xad4   : > { %2081 = vadd.xlane.f32.xlu0 %v2080_v58 }
 0xb61   : > { %v2082_v59 = vpop.xlane.xlu0 %2081 }
 0xb62   : > { %v2083_v60 = vmul.f32 0.03125, %v2082_v59 }
 0xb64   : > { %v2084_v42 = vadd.f32 1e-05, %v2083_v60 }
 0xb66   : > { %2614 = vrsqrt.f32 %v2084_v42 }
 0xb70   : > { %v2615_v61 = vpop.eup %2614 }
 0xb71   : > { %v2086_v48 = vmul.f32 %v2615_v61, %v2078_v56 }
 0xb73   : > { %v2091_v0 = vmul.f32 %v2361_v62, %v2086_v48 }
 0xb75   : > { %v2096_v2 = vadd.f32 %v2362_v63, %v2091_v0 }
 0xb77   : > { %2097 = vst.msk [vmem:[%s2932_s21] sm:$0xff] %vm644_vm1, %v2096_v2 }
 0xb78 PF: > { %s3298_s22 = sld [smem:[#allocation8_spill]]  ;;  %s3301_s29 = sld [smem:[#allocation24_spill]] }
 0xb79   : > { %s3299_s25 = sld [smem:[#allocation6_spill]]  ;;  %s2112_s16 = sshll.u32 %s2932_s21, 4  ;;  %s2113_s16 = int_to_ptr.vmem [resolvable:$true] %s2112_s16 }
 0xb7a   : > { %s2616_s27 = scalar_lea.vmem %s2113_s16, 128  ;;  %s2724_s3 = smov [#allocation2]  }
 0xb7b   : > { %p2617_p4 = scmp.ne.s32.totalorder %s2113_s16, %s2616_s27  ;;  %s2620_s14 = sshll.u32 %s2724_s3, 4  ;;  %s2621_s14 = int_to_ptr.vmem [resolvable:$false] %s2620_s14 }
 0xb7c   : > { %s2622_s2 = scalar_lea.vmem %s2621_s14, 256  ;;  %p2623_p7 = scmp.lt.s32.totalorder %s2113_s16, %s2621_s14 }
 0xb7d   : > { %p2618_p5 = pnand %p2617_p4, %p2844_p3  ;;  %p2624_p8 = scmp.lt.s32.totalorder %s2622_s2, %s2616_s27 }
 0xb7e   : > { %s2364_s20 = sshll.u32 %s3298_s22, 7  ;;  %s3302_s18 = smov %s3301_s29 }
 0xb7f   : > { %s3184_s30 = scalar_lea.hbm %s3301_s29, %s2364_s20  ;;  %s3303_s5 = sand.u32 1, %s3299_s25  }
 0xb80   : > { %s2099_s26 = scalar_lea.sflag [#allocation3], %s3303_s5  ;;  %p2619_p6 = pneg %p2618_p5 }
 0xb81   : > { %p2625_p10 = por %p2624_p8, %p2623_p7 }
 0xb83   : > { %p2626_p11 = pnand %p2625_p10, %p2619_p6 }
 0xb85   : > { %2629 = shalt.err (!%p2626_p11)
}
 0xb86   : > { %s2630_s21 = scalar_lea.hbm %s3184_s30, 128  ;;  %s2634_s0 = scalar_lea.hbm %s3302_s18, 256 }
 0xb87   : > { %p2631_p12 = scmp.ne.s32.totalorder %s3184_s30, %s2630_s21  ;;  %p2635_p1 = scmp.lt.u32.totalorder %s3184_s30, %s3302_s18 }
 0xb88   : > { %p2636_p2 = scmp.lt.u32.totalorder %s2634_s0, %s2630_s21  ;;  %p2638_p5 = scmp.lt.u32.totalorder %s2630_s21, %s3184_s30 }
 0xb89   : > { %p2632_p13 = pnand %p2631_p12, %p2844_p3 }
 0xb8a   : > { %p2637_p4 = por %p2636_p2, %p2635_p1 }
 0xb8b   : > { %p2633_p0 = pneg %p2632_p13 }
 0xb8c   : > { %p2639_p6 = por %p2638_p5, %p2637_p4 }
 0xb8e   : > { %p2640_p7 = pnand %p2639_p6, %p2633_p0 }
 0xb90   : > { %2643 = shalt.err (!%p2640_p7)
}
 0xb91   : > { %2497 = dma.vmem_to_hbm [thread:$0]  (%p2844_p3), %s2113_s16, 128, %s3184_s30, %s2099_s26  }
 0xb92 PF: > { %s3304_s17 = sld [smem:[#allocation11_spill]]  ;;  %s3305_s22 = sld [smem:[#allocation5_spill]] }
 0xb98   : > { %p2503_p8 = scmp.ge.s32.totalorder %s3304_s17, 2  ;;  %s2124_s20 = sand.u32 1, %s3305_s22  }
 0xb99   : > { %s2125_s23 = scalar_lea.sflag [#allocation3], %s2124_s20 }
 0xb9a   : > { %p2500_p10 = pnand %p2503_p8, %p2854_p9 }
 0xb9c   : > { %2677 = dma.done.wait (!%p2500_p10), %s2125_s23, 128  }
 0xb9d   : > { %2679 = vsyncadd (!%p2500_p10), %s2125_s23, 4294967168  ;;  %s26_s15 = sadd.s32 1, %s3304_s17   ;;  %s3307_s25 = sld [smem:[#allocation6_spill]] }
 0xb9e   : > { %p23_p11 = scmp.ge.s32.totalorder %s26_s15, 6   ;;  %s3308_s26 = sld [smem:[#allocation7_spill]] }
 0xb9f   : > { %s3309_s27 = sld [smem:[#allocation16_spill]]  ;;  %s3310_s28 = sld [smem:[#allocation9_spill]] }
 0xba0   : > { %s3311_s29 = sld [smem:[#allocation10_spill]]  ;;  %s3312_s30 = sld [smem:[#allocation12_spill]] }
 0xba1   : > { %s3313_s14 = sld [smem:[#allocation14_spill]]  ;;  %25 = sbr.rel (!%p23_p11) target bundleno = 13 (0xd), region = 152 }
 0xba8   :  { %2130 = vsyncpa [#allocation3], 1 }
 0xba9   :  { %2132 = vsyncpa [#allocation3 + $0x1], 1 }

</bundles_post_ra>
